<compile_context>
chip_gen: v5e
topology: v5e:2x2
jax: 0.10.0
libtpu: 0.0.40
codegen_flags: <defaults>
</compile_context>

<pallas_src>
import jax
import jax.numpy as jnp
import numpy as np
from jax import lax
from jax.experimental import pallas as pl
from jax.experimental.pallas import tpu as pltpu

EPS = 1e-5  # PyTorch BatchNorm default eps


def conve_kernel(x_ref, wbd_ref, cbias_ref, fcw_ref, fcb_ref, out_ref):
    # x_ref:     (TB, P*9)      im2col patches, row index b, column index p*9 + k
    # wbd_ref:   (P*9, P*32)    block-diagonal folded conv weight (kron(I_P, w9'))
    # cbias_ref: (1, P*32)      folded conv+BN0+BN1 bias, tiled over P
    # fcw_ref:   (P*32, Dp)     folded fc+BN2 weight (Dp = D padded to 128 lanes)
    # fcb_ref:   (1, Dp)        folded fc+BN2 bias
    # out_ref:   (TB, Dp)
    y = jnp.dot(x_ref[...], wbd_ref[...], preferred_element_type=jnp.float32)
    y = jnp.maximum(y + cbias_ref[...], 0.0)                       # conv + bn0/1 + relu
    z = jnp.dot(y, fcw_ref[...], preferred_element_type=jnp.float32)
    out_ref[...] = jnp.maximum(z + fcb_ref[...], 0.0)              # fc + bn2 + relu


def decoder_forward(params, head, rel, img_h=10):
    """Decoder.forward(E, R, head, rel, g) -> ConvE(h, r), eval-mode semantics."""
    f32 = jnp.float32
    E, R = params["E"], params["R"]
    D = E.shape[1]
    img_w = D // img_h
    oh, ow = 2 * img_h - 2, img_w - 2
    P = oh * ow

    # ---- embedding lookups + image assembly (glue) ----
    h = jnp.take(E, head, axis=0)
    r = jnp.take(R, rel, axis=0)
    B = h.shape[0]
    x = jnp.concatenate(
        [h.reshape(B, img_h, img_w), r.reshape(B, img_h, img_w)], axis=1)

    # im2col: x2d[b, p*9 + k], p = i*ow + j, k = di*3 + dj
    cols = []
    for di in range(3):
        for dj in range(3):
            cols.append(x[:, di:di + oh, dj:dj + ow].reshape(B, P))
    x2d = jnp.stack(cols, axis=-1).reshape(B, P * 9).astype(f32)

    # ---- fold BN0 + BN1 into the conv weight / bias (f32, in glue) ----
    a0 = params["bn0_g"] * lax.rsqrt(params["bn0_v"] + EPS)            # scalar
    c0 = params["bn0_b"] - params["bn0_m"] * a0                        # scalar
    w9 = params["conv_w"].reshape(32, 9).T.astype(f32)                 # (9, 32)
    a1 = params["bn1_g"] * lax.rsqrt(params["bn1_v"] + EPS)            # (32,)
    w9f = w9 * (a0 * a1)                                               # (9, 32)
    cbias = ((params["conv_b"].astype(f32) + c0 * w9.sum(axis=0))
             - params["bn1_m"]) * a1 + params["bn1_b"]                 # (32,)
    wbd = jnp.kron(jnp.eye(P, dtype=f32), w9f)                         # (P*9, P*32)
    cbias_row = jnp.tile(cbias, P).reshape(1, P * 32)                  # (1, P*32)

    # ---- fold BN2 into the fc weight / bias (f32, in glue) ----
    # PyTorch flatten order of the conv output is (C, H, W): column index c*P + p.
    a2 = params["bn2_g"] * lax.rsqrt(params["bn2_v"] + EPS)            # (D,)
    fcw = jnp.transpose(params["fc_w"].reshape(D, 32, P), (2, 1, 0))   # (P, 32, D)
    fcw = fcw.reshape(P * 32, D) * a2[None, :]                         # (P*32, D)
    fcb = (params["fc_b"] - params["bn2_m"]) * a2 + params["bn2_b"]    # (D,)

    # ---- lane/sublane-dense padding ----
    Dp = ((D + 127) // 128) * 128
    TB = 8
    Bp = ((B + TB - 1) // TB) * TB
    x_pad = jnp.zeros((Bp, P * 9), f32).at[:B].set(x2d)
    fcw_pad = jnp.zeros((P * 32, Dp), f32).at[:, :D].set(fcw)
    fcb_pad = jnp.zeros((1, Dp), f32).at[:, :D].set(fcb.reshape(1, D))

    nb = Bp // TB
    out = pl.pallas_call(
        conve_kernel,
        out_shape=jax.ShapeDtypeStruct((Bp, Dp), f32),
        grid=(nb,),
        in_specs=[
            pl.BlockSpec((TB, P * 9), lambda i: (i, 0)),
            pl.BlockSpec((P * 9, P * 32), lambda i: (0, 0)),
            pl.BlockSpec((1, P * 32), lambda i: (0, 0)),
            pl.BlockSpec((P * 32, Dp), lambda i: (0, 0)),
            pl.BlockSpec((1, Dp), lambda i: (0, 0)),
        ],
        out_specs=pl.BlockSpec((TB, Dp), lambda i: (i, 0)),
        compiler_params=pltpu.CompilerParams(
            dimension_semantics=("parallel",)),
    )(x_pad, wbd, cbias_row, fcw_pad, fcb_pad)
    return out[:B, :D]


def reference_forward(params, head, rel, img_h=10):
    """Pure-JAX reference reproducing the PyTorch (eval-mode) forward."""
    E, R = params["E"], params["R"]
    D = E.shape[1]
    img_w = D // img_h
    h = jnp.take(E, head, axis=0)
    r = jnp.take(R, rel, axis=0)
    B = h.shape[0]
    x = jnp.concatenate([h.reshape(B, 1, img_h, img_w),
                         r.reshape(B, 1, img_h, img_w)], axis=2)       # NCHW
    x = (x - params["bn0_m"]) / jnp.sqrt(params["bn0_v"] + EPS) \
        * params["bn0_g"] + params["bn0_b"]
    y = lax.conv_general_dilated(x, params["conv_w"], (1, 1), "VALID",
                                 dimension_numbers=("NCHW", "OIHW", "NCHW"))
    y = y + params["conv_b"].reshape(1, 32, 1, 1)
    y = (y - params["bn1_m"].reshape(1, 32, 1, 1)) \
        / jnp.sqrt(params["bn1_v"].reshape(1, 32, 1, 1) + EPS) \
        * params["bn1_g"].reshape(1, 32, 1, 1) + params["bn1_b"].reshape(1, 32, 1, 1)
    y = jnp.maximum(y, 0.0)
    y = y.reshape(B, -1)
    z = y @ params["fc_w"].T + params["fc_b"]
    z = (z - params["bn2_m"]) / jnp.sqrt(params["bn2_v"] + EPS) \
        * params["bn2_g"] + params["bn2_b"]
    return jnp.maximum(z, 0.0)


if __name__ == "__main__":
    key = jax.random.PRNGKey(0)
    entity_dim = 40            # must be divisible by img_h = 10
    img_h = 10
    img_w = entity_dim // img_h
    oh, ow = img_h * 2 - 2, img_w - 2
    hidden = 32 * oh * ow
    n_ent, n_rel, batch = 16, 8, 2

    ks = jax.random.split(key, 16)
    params = {
        "E": jax.random.normal(ks[0], (n_ent, entity_dim), jnp.float32),
        "R": jax.random.normal(ks[1], (n_rel, entity_dim), jnp.float32),
        "conv_w": jax.random.normal(ks[2], (32, 1, 3, 3), jnp.float32) * 0.1,
        "conv_b": jax.random.normal(ks[3], (32,), jnp.float32) * 0.1,
        "fc_w": jax.random.normal(ks[4], (entity_dim, hidden), jnp.float32) * 0.05,
        "fc_b": jax.random.normal(ks[5], (entity_dim,), jnp.float32) * 0.1,
        "bn0_g": jax.random.normal(ks[6], (), jnp.float32) * 0.1 + 1.0,
        "bn0_b": jax.random.normal(ks[7], (), jnp.float32) * 0.1,
        "bn0_m": jax.random.normal(ks[8], (), jnp.float32) * 0.1,
        "bn0_v": jnp.abs(jax.random.normal(ks[9], (), jnp.float32)) * 0.1 + 1.0,
        "bn1_g": jax.random.normal(ks[10], (32,), jnp.float32) * 0.1 + 1.0,
        "bn1_b": jax.random.normal(ks[11], (32,), jnp.float32) * 0.1,
        "bn1_m": jax.random.normal(ks[12], (32,), jnp.float32) * 0.1,
        "bn1_v": jnp.abs(jax.random.normal(ks[13], (32,), jnp.float32)) * 0.1 + 1.0,
        "bn2_g": jax.random.normal(ks[14], (entity_dim,), jnp.float32) * 0.1 + 1.0,
        "bn2_b": jax.random.normal(ks[15], (entity_dim,), jnp.float32) * 0.1,
        "bn2_m": jnp.zeros((entity_dim,), jnp.float32),
        "bn2_v": jnp.ones((entity_dim,), jnp.float32),
    }
    head = jnp.array([1, 5], dtype=jnp.int32)
    rel = jnp.array([0, 3], dtype=jnp.int32)

    out = jax.block_until_ready(decoder_forward(params, head, rel, img_h=img_h))
    ref = jax.block_until_ready(reference_forward(params, head, rel, img_h=img_h))
    assert out.shape == (batch, entity_dim)
    np.testing.assert_allclose(np.asarray(out), np.asarray(ref),
                               rtol=5e-4, atol=5e-4)
    print("KERNEL_OK")
</pallas_src>

<mosaic_0001>
module attributes {stable_mosaic.version = 11 : i64} {
  func.func @conve_kernel(%arg0: i32, %arg1: memref<8x324xf32, #tpu.memory_space<vmem>>, %arg2: memref<324x1152xf32, #tpu.memory_space<vmem>>, %arg3: memref<1x1152xf32, #tpu.memory_space<vmem>>, %arg4: memref<1152x128xf32, #tpu.memory_space<vmem>>, %arg5: memref<1x128xf32, #tpu.memory_space<vmem>>, %arg6: memref<8x128xf32, #tpu.memory_space<vmem>>) attributes {dimension_semantics = [#tpu.dimension_semantics<parallel>], iteration_bounds = array<i64: 1>, scalar_prefetch = 0 : i64, scratch_operands = 0 : i64, tpu.core_type = #tpu.core_type<tc>, window_params = [{transform_indices = @transform_0, window_bounds = array<i64: 8, 324>}, {pipeline_mode = #tpu.pipeline_mode<synchronous>, transform_indices = @transform_1, window_bounds = array<i64: 324, 1152>}, {pipeline_mode = #tpu.pipeline_mode<synchronous>, transform_indices = @transform_2, window_bounds = array<i64: 1, 1152>}, {pipeline_mode = #tpu.pipeline_mode<synchronous>, transform_indices = @transform_3, window_bounds = array<i64: 1152, 128>}, {pipeline_mode = #tpu.pipeline_mode<synchronous>, transform_indices = @transform_4, window_bounds = array<i64: 1, 128>}, {transform_indices = @transform_5, window_bounds = array<i64: 8, 128>}]} {
    %c0 = arith.constant 0 : index
    %c0_0 = arith.constant 0 : index
    %0 = vector.load %arg1[%c0, %c0_0] : memref<8x324xf32, #tpu.memory_space<vmem>>, vector<8x324xf32>
    %c0_1 = arith.constant 0 : index
    %c0_2 = arith.constant 0 : index
    %1 = vector.load %arg2[%c0_1, %c0_2] : memref<324x1152xf32, #tpu.memory_space<vmem>>, vector<324x1152xf32>
    %cst = arith.constant dense<0.000000e+00> : vector<8x1152xf32>
    %2 = tpu.matmul %0, %1, %cst {dimension_numbers = #tpu.dot_dimension_numbers<[1], [0], [0], [1], [0, 0, 1, 1], [], []>} : vector<8x324xf32>, vector<324x1152xf32>, vector<8x1152xf32> -> vector<8x1152xf32>
    %c0_3 = arith.constant 0 : index
    %c0_4 = arith.constant 0 : index
    %3 = vector.load %arg3[%c0_3, %c0_4] : memref<1x1152xf32, #tpu.memory_space<vmem>>, vector<1x1152xf32>
    %4 = vector.broadcast %3 : vector<1x1152xf32> to vector<8x1152xf32>
    %5 = arith.addf %2, %4 : vector<8x1152xf32>
    %cst_5 = arith.constant 0.000000e+00 : f32
    %6 = vector.broadcast %cst_5 : f32 to vector<8x1152xf32>
    %7 = arith.maximumf %5, %6 : vector<8x1152xf32>
    %c0_6 = arith.constant 0 : index
    %c0_7 = arith.constant 0 : index
    %8 = vector.load %arg4[%c0_6, %c0_7] : memref<1152x128xf32, #tpu.memory_space<vmem>>, vector<1152x128xf32>
    %cst_8 = arith.constant dense<0.000000e+00> : vector<8x128xf32>
    %9 = tpu.matmul %7, %8, %cst_8 {dimension_numbers = #tpu.dot_dimension_numbers<[1], [0], [0], [1], [0, 0, 1, 1], [], []>} : vector<8x1152xf32>, vector<1152x128xf32>, vector<8x128xf32> -> vector<8x128xf32>
    %c0_9 = arith.constant 0 : index
    %c0_10 = arith.constant 0 : index
    %10 = vector.load %arg5[%c0_9, %c0_10] : memref<1x128xf32, #tpu.memory_space<vmem>>, vector<1x128xf32>
    %11 = vector.broadcast %10 : vector<1x128xf32> to vector<8x128xf32>
    %12 = arith.addf %9, %11 : vector<8x128xf32>
    %cst_11 = arith.constant 0.000000e+00 : f32
    %13 = vector.broadcast %cst_11 : f32 to vector<8x128xf32>
    %14 = arith.maximumf %12, %13 : vector<8x128xf32>
    %c0_12 = arith.constant 0 : index
    %c0_13 = arith.constant 0 : index
    %15 = vector.load %arg6[%c0_12, %c0_13] : memref<8x128xf32, #tpu.memory_space<vmem>>, vector<8x128xf32>
    tpu.vector_store %arg6[%c0_12, %c0_13], %14 {strides = array<i32>} : memref<8x128xf32, #tpu.memory_space<vmem>>, vector<8x128xf32>,
    return
  }
  func.func @transform_0(%arg0: i32) -> (i32, i32) {
    %c0_i32 = arith.constant 0 : i32
    %c0_i32_0 = arith.constant 0 : i32
    return %arg0, %c0_i32 : i32, i32
  }
  func.func @transform_1(%arg0: i32) -> (i32, i32) {
    %c0_i32 = arith.constant 0 : i32
    %c0_i32_0 = arith.constant 0 : i32
    %c0_i32_1 = arith.constant 0 : i32
    return %c0_i32, %c0_i32_0 : i32, i32
  }
  func.func @transform_2(%arg0: i32) -> (i32, i32) {
    %c0_i32 = arith.constant 0 : i32
    %c0_i32_0 = arith.constant 0 : i32
    %c0_i32_1 = arith.constant 0 : i32
    return %c0_i32, %c0_i32_0 : i32, i32
  }
  func.func @transform_3(%arg0: i32) -> (i32, i32) {
    %c0_i32 = arith.constant 0 : i32
    %c0_i32_0 = arith.constant 0 : i32
    %c0_i32_1 = arith.constant 0 : i32
    return %c0_i32, %c0_i32_0 : i32, i32
  }
  func.func @transform_4(%arg0: i32) -> (i32, i32) {
    %c0_i32 = arith.constant 0 : i32
    %c0_i32_0 = arith.constant 0 : i32
    %c0_i32_1 = arith.constant 0 : i32
    return %c0_i32, %c0_i32_0 : i32, i32
  }
  func.func @transform_5(%arg0: i32) -> (i32, i32) {
    %c0_i32 = arith.constant 0 : i32
    %c0_i32_0 = arith.constant 0 : i32
    return %arg0, %c0_i32 : i32, i32
  }
}

</mosaic_0001>

<bundles_post_ra>
// kernel: tpu_custom_call.1
= control target key start
LH: loop header
LB: loop body
LE: loop exit
PB: predicated region body
PF: predicated region fallthrough
CT: control target
= control target key end

     0   :  { %10 = vsyncpa [#allocation3], 0  ;;  %s1726_s0 = inlined_call_operand.hbm [shape: f32[8,324], index: 0, kind: input, shape index: {}]   ;;  %s1727_s1 = inlined_call_operand.hbm [shape: f32[324,1152], index: 1, kind: input, shape index: {}]   ;;  %s1728_s2 = inlined_call_operand.hbm [shape: f32[1,1152], index: 2, kind: input, shape index: {}]   ;;  %s1729_s3 = inlined_call_operand.hbm [shape: f32[1152,128], index: 3, kind: input, shape index: {}]   ;;  %s1730_s4 = inlined_call_operand.hbm [shape: f32[1,128], index: 4, kind: input, shape index: {}]   ;;  %s1731_s5 = inlined_call_operand.hbm [shape: f32[8,128], index: 5, kind: output, shape index: {}]  }
   0x1   :  { %11 = vsyncpa [#allocation6], 0 }
   0x2   :  { %12 = vsyncpa [#allocation9], 0  ;;  %s29_s20 = sshll.u32 %s1727_s1, 4  ;;  %s30_s20 = int_to_ptr.hbm [resolvable:$true] %s29_s20 }
   0x3   :  { %13 = vsyncpa [#allocation4], 0  ;;  %s1602_s21 = smov [#allocation5]   ;;  %s53_s25 = sshll.u32 %s1729_s3, 4  ;;  %s54_s25 = int_to_ptr.hbm [resolvable:$true] %s53_s25 }
   0x4   :  { %s31_s22 = sshll.u32 %s1602_s21, 4  ;;  %s1603_s26 = smov 1152   ;;  %s32_s22 = int_to_ptr.vmem [resolvable:$true] %s31_s22 }
   0x5   :  { %s1604_s27 = smov 72   ;;  %s1605_s28 = smov [#allocation8]  }
   0x6   :  { %37 = dma.hbm_to_vmem [thread:$0]  %s30_s20, 47232, %s32_s22, [#allocation6], %s1603_s26, %s1603_s26, %s1604_s27  }
   0x7   :  { %s55_s29 = sshll.u32 %s1605_s28, 4  ;;  %s1606_s30 = smov 128   ;;  %s56_s29 = int_to_ptr.vmem [resolvable:$true] %s55_s29 }
   0x8   :  { %s1607_s6 = smov 8   ;;  %s19_s8 = sshll.u32 %s1726_s0, 4  ;;  %s20_s8 = int_to_ptr.hbm [resolvable:$true] %s19_s8 }
   0x9   :  { %61 = dma.hbm_to_vmem [thread:$0]  %s54_s25, 18432, %s56_s29, [#allocation9], %s1606_s30, %s1606_s30, %s1607_s6  }
   0xa   :  { %s1608_s9 = smov [#allocation2]   ;;  %s43_s12 = sshll.u32 %s1728_s2, 4  ;;  %s44_s12 = int_to_ptr.hbm [resolvable:$true] %s43_s12 }
   0xb   :  { %s21_s10 = sshll.u32 %s1608_s9, 4  ;;  %s1609_s13 = smov [#allocation7]   ;;  %s22_s10 = int_to_ptr.vmem [resolvable:$true] %s21_s10 }
   0xc   :  { %24 = dma.hbm_to_vmem [thread:$0]  %s20_s8, 384, %s22_s10, [#allocation3]  }
   0xd   :  { %s45_s14 = sshll.u32 %s1609_s13, 4  ;;  %s67_s17 = sshll.u32 %s1730_s4, 4  ;;  %s46_s14 = int_to_ptr.vmem [resolvable:$true] %s45_s14  ;;  %s68_s17 = int_to_ptr.hbm [resolvable:$true] %s67_s17 }
   0xe   :  { %48 = dma.hbm_to_vmem [thread:$0]  %s44_s12, 144, %s46_s14, [#allocation6]  }
   0xf   :  { %s1610_s0 = smov [#allocation10]  }
  0x10   :  { %s69_s18 = sshll.u32 %s1610_s0, 4  ;;  %s70_s18 = int_to_ptr.vmem [resolvable:$true] %s69_s18 }
  0x11   :  { %72 = dma.hbm_to_vmem [thread:$0]  %s68_s17, 16, %s70_s18, [#allocation9]  }
  0x12   :  { %1594 = dma.done.wait [#allocation3], 384  }
  0x13   :  { %1595 = vsyncadd [#allocation3], 4294966912 }
  0x14   :  { %1596 = dma.done.wait [#allocation6], 47376  }
  0x15   :  { %1597 = vsyncadd [#allocation6], 4294919920 }
  0x16   :  { %1598 = dma.done.wait [#allocation9], 18448  }
  0x17   :  { %1599 = vsyncadd [#allocation9], 4294948848  ;;  %vm491_vm0 = vcmask 1043456   ;;  %v231_v0 = vld [vmem:[#allocation5 + $0x438] sm:$0xff]  ;;  %v456_v2 = vld [vmem:[#allocation5 + $0xb40] sm:$0xf] }
  0x18   :  { %v375_v1 = vld [vmem:[#allocation5 + $0x8b8] sm:$0xff]  ;;  %519 = vmatpush.msra.mxu0 %v231_v0  ;;  %v222_v3 = vld [vmem:[#allocation5 + $0x3f0] sm:$0xff]  ;;  %1417 = vmatpush.msk.msra.mxu2 %vm491_vm0, %v456_v2  ;;  %v213_v6 = vld [vmem:[#allocation5 + $0x3a8] sm:$0xff]  ;;  %vm487_vm1 = vcmask 556032   ;;  %s1611_s2 = smov [#allocation11]   ;;  %s1405_s21 = sshll.u32 %s1731_s5, 4  ;;  %s1406_s21 = int_to_ptr.hbm [resolvable:$true] %s1405_s21 }
  0x19   :  { %539 = vmatpush.msra.mxu1 %v375_v1  ;;  %v366_v4 = vld [vmem:[#allocation5 + $0x870] sm:$0xff]  ;;  %v447_v5 = vld [vmem:[#allocation5 + $0xaf8] sm:$0xff]  ;;  %v357_v7 = vld [vmem:[#allocation5 + $0x828] sm:$0xff]  ;;  %s1403_s4 = sshll.u32 %s1611_s2, 4  ;;  %s1404_s4 = int_to_ptr.vmem [resolvable:$true] %s1403_s4 }
  0x1a   :  { %520 = vmatpush.msra.mxu0 %v222_v3  ;;  %v438_v8 = vld [vmem:[#allocation5 + $0xab0] sm:$0xff]  ;;  %567 = vmatpush.msra.mxu2 %v447_v5  ;;  %v204_v9 = vld [vmem:[#allocation5 + $0x360] sm:$0xff]  ;;  %v429_v11 = vld [vmem:[#allocation5 + $0xa68] sm:$0xff] }
  0x1b   :  { %540 = vmatpush.msra.mxu1 %v366_v4  ;;  %v348_v10 = vld [vmem:[#allocation5 + $0x7e0] sm:$0xff]  ;;  %v195_v12 = vld [vmem:[#allocation5 + $0x318] sm:$0xff]  ;;  %v186_v17 = vld [vmem:[#allocation5 + $0x2d0] sm:$0xff] }
  0x1c   :  { %521 = vmatpush.msra.mxu0 %v213_v6  ;;  %568 = vmatpush.msra.mxu2 %v438_v8  ;;  %v339_v13 = vld [vmem:[#allocation5 + $0x798] sm:$0xff]  ;;  %v232_v14 = vld [vmem:[#allocation5 + $0x440] sm:$0xff]  ;;  %v330_v18 = vld [vmem:[#allocation5 + $0x750] sm:$0xff] }
  0x1d   :  { %541 = vmatpush.msra.mxu1 %v357_v7  ;;  %v420_v15 = vld [vmem:[#allocation5 + $0xa20] sm:$0xff]  ;;  %v223_v16 = vld [vmem:[#allocation5 + $0x3f8] sm:$0xff]  ;;  %579 = vmatpush.msra.mxu3 %v232_v14  ;;  %v214_v20 = vld [vmem:[#allocation5 + $0x3b0] sm:$0xff] }
  0x1e   :  { %522 = vmatpush.msra.mxu0 %v204_v9  ;;  %569 = vmatpush.msra.mxu2 %v429_v11  ;;  %v411_v19 = vld [vmem:[#allocation5 + $0x9d8] sm:$0xff]  ;;  %v177_v21 = vld [vmem:[#allocation5 + $0x288] sm:$0xff]  ;;  %v402_v23 = vld [vmem:[#allocation5 + $0x990] sm:$0xff] }
  0x1f   :  { %542 = vmatpush.msra.mxu1 %v348_v10  ;;  %v321_v22 = vld [vmem:[#allocation5 + $0x708] sm:$0xff]  ;;  %580 = vmatpush.msra.mxu3 %v223_v16  ;;  %v168_v25 = vld [vmem:[#allocation5 + $0x240] sm:$0xff]  ;;  %v159_v29 = vld [vmem:[#allocation5 + $0x1f8] sm:$0xff] }
  0x20   :  { %523 = vmatpush.msra.mxu0 %v195_v12  ;;  %570 = vmatpush.msra.mxu2 %v420_v15  ;;  %v205_v24 = vld [vmem:[#allocation5 + $0x368] sm:$0xff]  ;;  %v312_v26 = vld [vmem:[#allocation5 + $0x6c0] sm:$0xff]  ;;  %v303_v30 = vld [vmem:[#allocation5 + $0x678] sm:$0xff] }
  0x21   :  { %543 = vmatpush.msra.mxu1 %v339_v13  ;;  %581 = vmatpush.msra.mxu3 %v214_v20  ;;  %v393_v27 = vld [vmem:[#allocation5 + $0x948] sm:$0xff]  ;;  %v196_v28 = vld [vmem:[#allocation5 + $0x320] sm:$0xff]  ;;  %v187_v32 = vld [vmem:[#allocation5 + $0x2d8] sm:$0xff] }
  0x22   :  { %524 = vmatpush.msra.mxu0 %v186_v17  ;;  %571 = vmatpush.msra.mxu2 %v411_v19  ;;  %v384_v31 = vld [vmem:[#allocation5 + $0x900] sm:$0xff]  ;;  %v150_v34 = vld [vmem:[#allocation5 + $0x1b0] sm:$0xff]  ;;  %v367_v37 = vld [vmem:[#allocation5 + $0x878] sm:$0xff] }
  0x23   :  { %544 = vmatpush.msra.mxu1 %v330_v18  ;;  %582 = vmatpush.msra.mxu3 %v205_v24  ;;  %v376_v33 = vld [vmem:[#allocation5 + $0x8c0] sm:$0xff]  ;;  %v294_v35 = vld [vmem:[#allocation5 + $0x630] sm:$0xff]  ;;  %v141_v38 = vld [vmem:[#allocation5 + $0x168] sm:$0xff] }
  0x24   :  { %525 = vmatpush.msra.mxu0 %v177_v21  ;;  %572 = vmatpush.msra.mxu2 %v402_v23  ;;  %v178_v36 = vld [vmem:[#allocation5 + $0x290] sm:$0xff]  ;;  %v285_v39 = vld [vmem:[#allocation5 + $0x5e8] sm:$0xff]  ;;  %v132_v42 = vld [vmem:[#allocation5 + $0x120] sm:$0xff] }
  0x25   :  { %545 = vmatpush.msra.mxu1 %v321_v22  ;;  %583 = vmatpush.msra.mxu3 %v196_v28  ;;  %v169_v40 = vld [vmem:[#allocation5 + $0x248] sm:$0xff]  ;;  %v358_v41 = vld [vmem:[#allocation5 + $0x830] sm:$0xff]  ;;  %v276_v43 = vld [vmem:[#allocation5 + $0x5a0] sm:$0xff] }
  0x26   :  { %526 = vmatpush.msra.mxu0 %v168_v25  ;;  %573 = vmatpush.msra.mxu2 %v393_v27  ;;  %v160_v44 = vld [vmem:[#allocation5 + $0x200] sm:$0xff]  ;;  %v349_v45 = vld [vmem:[#allocation5 + $0x7e8] sm:$0xff]  ;;  %v123_v46 = vld [vmem:[#allocation5 + $0xd8] sm:$0xff] }
  0x27   :  { %546 = vmatpush.msra.mxu1 %v312_v26  ;;  %584 = vmatpush.msra.mxu3 %v187_v32  ;;  %v267_v47 = vld [vmem:[#allocation5 + $0x558] sm:$0xff]  ;;  %v340_v49 = vld [vmem:[#allocation5 + $0x7a0] sm:$0xff]  ;;  %v114_v50 = vld [vmem:[#allocation5 + $0x90] sm:$0xff] }
  0x28   :  { %527 = vmatpush.msra.mxu0 %v159_v29  ;;  %574 = vmatpush.msra.mxu2 %v384_v31  ;;  %v151_v48 = vld [vmem:[#allocation5 + $0x1b8] sm:$0xff]  ;;  %v258_v51 = vld [vmem:[#allocation5 + $0x510] sm:$0xff]  ;;  %v105_v54 = vld [vmem:[#allocation5 + $0x48] sm:$0xff] }
  0x29   :  { %547 = vmatpush.msra.mxu1 %v303_v30  ;;  %585 = vmatpush.msra.mxu3 %v178_v36  ;;  %v142_v52 = vld [vmem:[#allocation5 + $0x170] sm:$0xff]  ;;  %v331_v53 = vld [vmem:[#allocation5 + $0x758] sm:$0xff]  ;;  %v249_v55 = vld [vmem:[#allocation5 + $0x4c8] sm:$0xff] }
  0x2a   :  { %599 = vmatpush.msrb.mxu2 %v376_v33  ;;  %528 = vmatpush.msra.mxu0 %v150_v34  ;;  %v133_v56 = vld [vmem:[#allocation5 + $0x128] sm:$0xff]  ;;  %v322_v57 = vld [vmem:[#allocation5 + $0x710] sm:$0xff]  ;;  %v96_v58 = vld [vmem:[#allocation5] sm:$0xff] }
  0x2b   :  { %548 = vmatpush.msra.mxu1 %v294_v35  ;;  %586 = vmatpush.msra.mxu3 %v169_v40  ;;  %v240_v59 = vld [vmem:[#allocation5 + $0x480] sm:$0xff]  ;;  %v457_v60 = vld [vmem:[#allocation5 + $0xb48] sm:$0xf]  ;;  %v439_v3 = vld [vmem:[#allocation5 + $0xab8] sm:$0xff] }
  0x2c   :  { %600 = vmatpush.msrb.mxu2 %v367_v37  ;;  %529 = vmatpush.msra.mxu0 %v141_v38  ;;  %v313_v61 = vld [vmem:[#allocation5 + $0x6c8] sm:$0xff]  ;;  %v448_v63 = vld [vmem:[#allocation5 + $0xb00] sm:$0xff]  ;;  %v115_v4 = vld [vmem:[#allocation5 + $0x98] sm:$0xff] }
  0x2d   :  { %549 = vmatpush.msra.mxu1 %v285_v39  ;;  %587 = vmatpush.msra.mxu3 %v160_v44  ;;  %v233_v62 = vld [vmem:[#allocation5 + $0x448] sm:$0xff]  ;;  %v124_v0 = vld [vmem:[#allocation5 + $0xe0] sm:$0xff]  ;;  %v295_v5 = vld [vmem:[#allocation5 + $0x638] sm:$0xff] }
  0x2e   :  { %601 = vmatpush.msrb.mxu2 %v358_v41  ;;  %530 = vmatpush.msra.mxu0 %v132_v42  ;;  %v304_v1 = vld [vmem:[#allocation5 + $0x680] sm:$0xff]  ;;  %v215_v6 = vld [vmem:[#allocation5 + $0x3b8] sm:$0xff]  ;;  %v430_v7 = vld [vmem:[#allocation5 + $0xa70] sm:$0xff] }
  0x2f   :  { %550 = vmatpush.msra.mxu1 %v276_v43  ;;  %588 = vmatpush.msra.mxu3 %v151_v48  ;;  %v224_v2 = vld [vmem:[#allocation5 + $0x400] sm:$0xff]  ;;  %v106_v8 = vld [vmem:[#allocation5 + $0x50] sm:$0xff]  ;;  %v421_v11 = vld [vmem:[#allocation5 + $0xa28] sm:$0xff] }
  0x30   :  { %602 = vmatpush.msrb.mxu2 %v349_v45  ;;  %531 = vmatpush.msra.mxu0 %v123_v46  ;;  %v286_v9 = vld [vmem:[#allocation5 + $0x5f0] sm:$0xff]  ;;  %v97_v12 = vld [vmem:[#allocation5 + $0x8] sm:$0xff]  ;;  %v412_v15 = vld [vmem:[#allocation5 + $0x9e0] sm:$0xff] }
  0x31   :  { %551 = vmatpush.msra.mxu1 %v267_v47  ;;  %589 = vmatpush.msra.mxu3 %v142_v52  ;;  %v206_v10 = vld [vmem:[#allocation5 + $0x370] sm:$0xff]  ;;  %v277_v13 = vld [vmem:[#allocation5 + $0x5a8] sm:$0xff]  ;;  %v268_v17 = vld [vmem:[#allocation5 + $0x560] sm:$0xff] }
  0x32   :  { %603 = vmatpush.msrb.mxu2 %v340_v49  ;;  %532 = vmatpush.msra.mxu0 %v114_v50  ;;  %v197_v14 = vld [vmem:[#allocation5 + $0x328] sm:$0xff]  ;;  %v188_v18 = vld [vmem:[#allocation5 + $0x2e0] sm:$0xff]  ;;  %v403_v19 = vld [vmem:[#allocation5 + $0x998] sm:$0xff] }
  0x33   :  { %552 = vmatpush.msra.mxu1 %v258_v51  ;;  %590 = vmatpush.msra.mxu3 %v133_v56  ;;  %v377_v16 = vld [vmem:[#allocation5 + $0x8c8] sm:$0xff]  ;;  %v368_v20 = vld [vmem:[#allocation5 + $0x880] sm:$0xff]  ;;  %v259_v21 = vld [vmem:[#allocation5 + $0x518] sm:$0xff] }
  0x34   :  { %604 = vmatpush.msrb.mxu2 %v331_v53  ;;  %533 = vmatpush.msra.mxu0 %v105_v54  ;;  %v179_v22 = vld [vmem:[#allocation5 + $0x298] sm:$0xff]  ;;  %v394_v23 = vld [vmem:[#allocation5 + $0x950] sm:$0xff]  ;;  %v385_v27 = vld [vmem:[#allocation5 + $0x908] sm:$0xff] }
  0x35   :  { %553 = vmatpush.msra.mxu1 %v249_v55  ;;  %591 = vmatpush.msra.mxu3 %v124_v0  ;;  %v359_v24 = vld [vmem:[#allocation5 + $0x838] sm:$0xff]  ;;  %v250_v25 = vld [vmem:[#allocation5 + $0x4d0] sm:$0xff]  ;;  %v241_v29 = vld [vmem:[#allocation5 + $0x488] sm:$0xff] }
  0x36   :  { %605 = vmatpush.msrb.mxu2 %v322_v57  ;;  %534 = vmatpush.msra.mxu0 %v96_v58  ;;  %v170_v26 = vld [vmem:[#allocation5 + $0x250] sm:$0xff]  ;;  %v161_v30 = vld [vmem:[#allocation5 + $0x208] sm:$0xff]  ;;  %v1661_v32 = vld [vmem:[#allocation2 + $0x10] sm:$0xff] }
  0x37   :  { %554 = vmatpush.msra.mxu1 %v240_v59  ;;  %592 = vmatpush.msra.mxu3 %v115_v4  ;;  %v350_v28 = vld [vmem:[#allocation5 + $0x7f0] sm:$0xff]  ;;  %v1659_v31 = vld [vmem:[#allocation2] sm:$0xff]  ;;  %v152_v35 = vld [vmem:[#allocation5 + $0x1c0] sm:$0xff] }
  0x38   :  { %1419 = vmatpush.msk.msrb.mxu0 %vm491_vm0, %v457_v60  ;;  %606 = vmatpush.msrb.mxu2 %v313_v61  ;;  %v458_v33 = vld [vmem:[#allocation5 + $0xb50] sm:$0xf]  ;;  %v341_v36 = vld [vmem:[#allocation5 + $0x7a8] sm:$0xff]  ;;  %v143_v39 = vld [vmem:[#allocation5 + $0x178] sm:$0xff] }
  0x39   :  { %639 = vmatpush.msrb.mxu1 %v233_v62  ;;  %593 = vmatpush.msra.mxu3 %v106_v8  ;;  %v234_v34 = vld [vmem:[#allocation5 + $0x450] sm:$0xff]  ;;  %v449_v37 = vld [vmem:[#allocation5 + $0xb08] sm:$0xff]  ;;  %v332_v40 = vld [vmem:[#allocation5 + $0x760] sm:$0xff] }
  0x3a   :  { %627 = vmatpush.msrb.mxu0 %v448_v63  ;;  %607 = vmatpush.msrb.mxu2 %v304_v1  ;;  %v225_v38 = vld [vmem:[#allocation5 + $0x408] sm:$0xff]  ;;  %v1667_v41 = vld [vmem:[#allocation2 + $0x8] sm:$0xff]  ;;  %v440_v42 = vld [vmem:[#allocation5 + $0xac0] sm:$0xff] }
  0x3b   :  { %640 = vmatpush.msrb.mxu1 %v224_v2  ;;  %594 = vmatpush.msra.mxu3 %v97_v12  ;;  %v216_v43 = vld [vmem:[#allocation5 + $0x3c0] sm:$0xff]  ;;  %v134_v44 = vld [vmem:[#allocation5 + $0x130] sm:$0xff]  ;;  %v323_v45 = vld [vmem:[#allocation5 + $0x718] sm:$0xff] }
  0x3c   :  { %628 = vmatpush.msrb.mxu0 %v439_v3  ;;  %608 = vmatpush.msrb.mxu2 %v295_v5  ;;  %v431_v46 = vld [vmem:[#allocation5 + $0xa78] sm:$0xff]  ;;  %v125_v48 = vld [vmem:[#allocation5 + $0xe8] sm:$0xff]  ;;  %v314_v49 = vld [vmem:[#allocation5 + $0x6d0] sm:$0xff] }
  0x3d   :  { %641 = vmatpush.msrb.mxu1 %v215_v6  ;;  %659 = vmatpush.msrb.mxu3 %v377_v16  ;;  %v207_v47 = vld [vmem:[#allocation5 + $0x378] sm:$0xff]  ;;  %v422_v50 = vld [vmem:[#allocation5 + $0xa30] sm:$0xff]  ;;  %v116_v52 = vld [vmem:[#allocation5 + $0xa0] sm:$0xff] }
  0x3e   :  { %629 = vmatpush.msrb.mxu0 %v430_v7  ;;  %609 = vmatpush.msrb.mxu2 %v286_v9  ;;  %v198_v51 = vld [vmem:[#allocation5 + $0x330] sm:$0xff]  ;;  %v305_v53 = vld [vmem:[#allocation5 + $0x688] sm:$0xff]  ;;  %v107_v56 = vld [vmem:[#allocation5 + $0x58] sm:$0xff] }
  0x3f   :  { %642 = vmatpush.msrb.mxu1 %v206_v10  ;;  %660 = vmatpush.msrb.mxu3 %v368_v20  ;;  %v413_v54 = vld [vmem:[#allocation5 + $0x9e8] sm:$0xff]  ;;  %v296_v57 = vld [vmem:[#allocation5 + $0x640] sm:$0xff]  ;;  %v98_v60 = vld [vmem:[#allocation5 + $0x10] sm:$0xff] }
  0x40   :  { %630 = vmatpush.msrb.mxu0 %v421_v11  ;;  %610 = vmatpush.msrb.mxu2 %v277_v13  ;;  %v189_v55 = vld [vmem:[#allocation5 + $0x2e8] sm:$0xff]  ;;  %v404_v58 = vld [vmem:[#allocation5 + $0x9a0] sm:$0xff]  ;;  %v287_v61 = vld [vmem:[#allocation5 + $0x5f8] sm:$0xff] }
  0x41   :  { %643 = vmatpush.msrb.mxu1 %v197_v14  ;;  %661 = vmatpush.msrb.mxu3 %v359_v24  ;;  %v180_v59 = vld [vmem:[#allocation5 + $0x2a0] sm:$0xff]  ;;  %v395_v62 = vld [vmem:[#allocation5 + $0x958] sm:$0xff]  ;;  %v378_v0 = vld [vmem:[#allocation5 + $0x8d0] sm:$0xff] }
  0x42   :  { %631 = vmatpush.msrb.mxu0 %v412_v15  ;;  %611 = vmatpush.msrb.mxu2 %v268_v17  ;;  %v171_v63 = vld [vmem:[#allocation5 + $0x258] sm:$0xff]  ;;  %v278_v1 = vld [vmem:[#allocation5 + $0x5b0] sm:$0xff]  ;;  %v369_v4 = vld [vmem:[#allocation5 + $0x888] sm:$0xff] }
  0x43   :  { %644 = vmatpush.msrb.mxu1 %v188_v18  ;;  %662 = vmatpush.msrb.mxu3 %v350_v28  ;;  %v386_v2 = vld [vmem:[#allocation5 + $0x910] sm:$0xff]  ;;  %v269_v5 = vld [vmem:[#allocation5 + $0x568] sm:$0xff]  ;;  %v235_v6 = vld [vmem:[#allocation5 + $0x458] sm:$0xff] }
  0x44   :  { %632 = vmatpush.msrb.mxu0 %v403_v19  ;;  %612 = vmatpush.msrb.mxu2 %v259_v21  ;;  %v162_v3 = vld [vmem:[#allocation5 + $0x210] sm:$0xff]  ;;  %v153_v7 = vld [vmem:[#allocation5 + $0x1c8] sm:$0xff]  ;;  %v360_v8 = vld [vmem:[#allocation5 + $0x840] sm:$0xff] }
  0x45   :  { %645 = vmatpush.msrb.mxu1 %v179_v22  ;;  %535 = vmatmul.f32.vlgmr.msra.gmra.mxu0 %v1659_v31  ;;  %v260_v9 = vld [vmem:[#allocation5 + $0x520] sm:$0xff]  ;;  %v226_v10 = vld [vmem:[#allocation5 + $0x410] sm:$0xff]  ;;  %v351_v12 = vld [vmem:[#allocation5 + $0x7f8] sm:$0xff] }
  0x46   :  { %633 = vmatpush.msrb.mxu0 %v394_v23  ;;  %613 = vmatpush.msrb.mxu2 %v250_v25  ;;  %v144_v11 = vld [vmem:[#allocation5 + $0x180] sm:$0xff]  ;;  %v251_v13 = vld [vmem:[#allocation5 + $0x4d8] sm:$0xff]  ;;  %v217_v14 = vld [vmem:[#allocation5 + $0x3c8] sm:$0xff] }
  0x47   :  { %646 = vmatpush.msrb.mxu1 %v170_v26  ;;  %1418 = vmatmul.msk.f32.vlgmr.msra.gmra.mxu2 %vm487_vm1, %v1661_v32  ;;  %v135_v15 = vld [vmem:[#allocation5 + $0x138] sm:$0xff]  ;;  %v342_v16 = vld [vmem:[#allocation5 + $0x7b0] sm:$0xff]  ;;  %v208_v18 = vld [vmem:[#allocation5 + $0x380] sm:$0xff] }
  0x48   :  { %634 = vmatpush.msrb.mxu0 %v385_v27  ;;  %614 = vmatpush.msrb.mxu2 %v241_v29  ;;  %v242_v17 = vld [vmem:[#allocation5 + $0x490] sm:$0xff]  ;;  %v333_v20 = vld [vmem:[#allocation5 + $0x768] sm:$0xff]  ;;  %v459_v21 = vld [vmem:[#allocation5 + $0xb58] sm:$0xf] }
  0x49   :  { %647 = vmatpush.msrb.mxu1 %v161_v30  ;;  %663 = vmatpush.msrb.mxu3 %v341_v36  ;;  %v126_v19 = vld [vmem:[#allocation5 + $0xf0] sm:$0xff]  ;;  %v199_v22 = vld [vmem:[#allocation5 + $0x338] sm:$0xff]  ;;  %v117_v23 = vld [vmem:[#allocation5 + $0xa8] sm:$0xff] }
  0x4a   :  { %1421 = vmatpush.msk.msra.mxu0 %vm491_vm0, %v458_v33  ;;  %699 = vmatpush.msra.mxu2 %v234_v34  ;;  %v324_v24 = vld [vmem:[#allocation5 + $0x720] sm:$0xff]  ;;  %v450_v25 = vld [vmem:[#allocation5 + $0xb10] sm:$0xff]  ;;  %v315_v28 = vld [vmem:[#allocation5 + $0x6d8] sm:$0xff] }
  0x4b   :  { %648 = vmatpush.msrb.mxu1 %v152_v35  ;;  %664 = vmatpush.msrb.mxu3 %v332_v40  ;;  %v190_v26 = vld [vmem:[#allocation5 + $0x2f0] sm:$0xff]  ;;  %v108_v27 = vld [vmem:[#allocation5 + $0x60] sm:$0xff]  ;;  %v441_v29 = vld [vmem:[#allocation5 + $0xac8] sm:$0xff] }
  0x4c   :  { %687 = vmatpush.msra.mxu0 %v449_v37  ;;  %700 = vmatpush.msra.mxu2 %v225_v38  ;;  %v181_v30 = vld [vmem:[#allocation5 + $0x2a8] sm:$0xff]  ;;  %v99_v33 = vld [vmem:[#allocation5 + $0x18] sm:$0xff]  ;;  %v306_v34 = vld [vmem:[#allocation5 + $0x690] sm:$0xff] }
  0x4d   :  { %649 = vmatpush.msrb.mxu1 %v143_v39  ;;  %665 = vmatpush.msrb.mxu3 %v323_v45  ;;  %v432_v35 = vld [vmem:[#allocation5 + $0xa80] sm:$0xff]  ;;  %v379_v37 = vld [vmem:[#allocation5 + $0x8d8] sm:$0xff]  ;;  %v297_v38 = vld [vmem:[#allocation5 + $0x648] sm:$0xff] }
  0x4e   :  { %555 = vmatmul.f32.vlgmr.msra.gmra.mxu1 %v1667_v41  ;;  %688 = vmatpush.msra.mxu0 %v440_v42  ;;  %v172_v36 = vld [vmem:[#allocation5 + $0x260] sm:$0xff]  ;;  %v423_v39 = vld [vmem:[#allocation5 + $0xa38] sm:$0xff]  ;;  %v370_v42 = vld [vmem:[#allocation5 + $0x890] sm:$0xff] }
  0x4f   :  { %701 = vmatpush.msra.mxu2 %v216_v43  ;;  %650 = vmatpush.msrb.mxu1 %v134_v44  ;;  %v163_v40 = vld [vmem:[#allocation5 + $0x218] sm:$0xff]  ;;  %v288_v43 = vld [vmem:[#allocation5 + $0x600] sm:$0xff]  ;;  %v414_v44 = vld [vmem:[#allocation5 + $0x9f0] sm:$0xff] }
  0x50   :  { %689 = vmatpush.msra.mxu0 %v431_v46  ;;  %666 = vmatpush.msrb.mxu3 %v314_v49  ;;  %v154_v45 = vld [vmem:[#allocation5 + $0x1d0] sm:$0xff]  ;;  %v361_v46 = vld [vmem:[#allocation5 + $0x848] sm:$0xff] }
  0x51   :  { %702 = vmatpush.msra.mxu2 %v207_v47  ;;  %651 = vmatpush.msrb.mxu1 %v125_v48  ;;  %v279_v47 = vld [vmem:[#allocation5 + $0x5b8] sm:$0xff]  ;;  %v405_v48 = vld [vmem:[#allocation5 + $0x9a8] sm:$0xff] }
  0x52   :  { %690 = vmatpush.msra.mxu0 %v422_v50  ;;  %667 = vmatpush.msrb.mxu3 %v305_v53  ;;  %v145_v49 = vld [vmem:[#allocation5 + $0x188] sm:$0xff]  ;;  %v352_v50 = vld [vmem:[#allocation5 + $0x800] sm:$0xff] }
  0x53   :  { %703 = vmatpush.msra.mxu2 %v198_v51  ;;  %652 = vmatpush.msrb.mxu1 %v116_v52  ;;  %v270_v51 = vld [vmem:[#allocation5 + $0x570] sm:$0xff]  ;;  %v396_v52 = vld [vmem:[#allocation5 + $0x960] sm:$0xff] }
  0x54   :  { %691 = vmatpush.msra.mxu0 %v413_v54  ;;  %668 = vmatpush.msrb.mxu3 %v296_v57  ;;  %v136_v53 = vld [vmem:[#allocation5 + $0x140] sm:$0xff]  ;;  %v343_v54 = vld [vmem:[#allocation5 + $0x7b8] sm:$0xff] }
  0x55   :  { %704 = vmatpush.msra.mxu2 %v189_v55  ;;  %653 = vmatpush.msrb.mxu1 %v107_v56  ;;  %v261_v55 = vld [vmem:[#allocation5 + $0x528] sm:$0xff]  ;;  %v387_v56 = vld [vmem:[#allocation5 + $0x918] sm:$0xff] }
  0x56   :  { %692 = vmatpush.msra.mxu0 %v404_v58  ;;  %669 = vmatpush.msrb.mxu3 %v287_v61  ;;  %v127_v57 = vld [vmem:[#allocation5 + $0xf8] sm:$0xff]  ;;  %v334_v58 = vld [vmem:[#allocation5 + $0x770] sm:$0xff] }
  0x57   :  { %705 = vmatpush.msra.mxu2 %v180_v59  ;;  %654 = vmatpush.msrb.mxu1 %v98_v60  ;;  %v460_v59 = vld [vmem:[#allocation5 + $0xb60] sm:$0xf]  ;;  %v118_v61 = vld [vmem:[#allocation5 + $0xb0] sm:$0xff] }
  0x58   :  { %693 = vmatpush.msra.mxu0 %v395_v62  ;;  %595 = vmatmul.f32.vlgmr.msra.gmra.mxu3 %v1659_v31  ;;  %v252_v60 = vld [vmem:[#allocation5 + $0x4e0] sm:$0xff]  ;;  %v325_v62 = vld [vmem:[#allocation5 + $0x728] sm:$0xff] }
  0x59   :  { %706 = vmatpush.msra.mxu2 %v171_v63  ;;  %719 = vmatpush.msra.mxu1 %v378_v0  ;;  %v451_v63 = vld [vmem:[#allocation5 + $0xb18] sm:$0xff] }
  0x5a   :  { %670 = vmatpush.msrb.mxu3 %v278_v1  ;;  %615 = vmatmul.f32.vlgmr.msrb.gmra.mxu2 %v1667_v41  ;;  %v243_v0 = vld [vmem:[#allocation5 + $0x498] sm:$0xff]  ;;  %v109_v1 = vld [vmem:[#allocation5 + $0x68] sm:$0xff] }
  0x5b   :  { %694 = vmatpush.msra.mxu0 %v386_v2  ;;  %707 = vmatpush.msra.mxu2 %v162_v3  ;;  %v316_v2 = vld [vmem:[#allocation5 + $0x6e0] sm:$0xff]  ;;  %v442_v3 = vld [vmem:[#allocation5 + $0xad0] sm:$0xff] }
  0x5c   :  { %720 = vmatpush.msra.mxu1 %v369_v4  ;;  %1420 = vmatmul.msk.f32.vlgmr.msrb.gmra.mxu0 %vm487_vm1, %v1661_v32  ;;  %v236_v4 = vld [vmem:[#allocation5 + $0x460] sm:$0xff] }
  0x5d   :  { %671 = vmatpush.msrb.mxu3 %v269_v5  ;;  %759 = vmatpush.msrb.mxu0 %v235_v6  ;;  %v100_v5 = vld [vmem:[#allocation5 + $0x20] sm:$0xff]  ;;  %v307_v6 = vld [vmem:[#allocation5 + $0x698] sm:$0xff] }
  0x5e   :  { %708 = vmatpush.msra.mxu2 %v153_v7  ;;  %721 = vmatpush.msra.mxu1 %v360_v8  ;;  %v433_v7 = vld [vmem:[#allocation5 + $0xa88] sm:$0xff]  ;;  %v227_v8 = vld [vmem:[#allocation5 + $0x418] sm:$0xff] }
  0x5f   :  { %672 = vmatpush.msrb.mxu3 %v260_v9  ;;  %760 = vmatpush.msrb.mxu0 %v226_v10  ;;  %v380_v9 = vld [vmem:[#allocation5 + $0x8e0] sm:$0xff]  ;;  %v298_v10 = vld [vmem:[#allocation5 + $0x650] sm:$0xff] }
  0x60   :  { %709 = vmatpush.msra.mxu2 %v144_v11  ;;  %722 = vmatpush.msra.mxu1 %v351_v12  ;;  %v424_v11 = vld [vmem:[#allocation5 + $0xa40] sm:$0xff]  ;;  %v218_v12 = vld [vmem:[#allocation5 + $0x3d0] sm:$0xff] }
  0x61   :  { %673 = vmatpush.msrb.mxu3 %v251_v13  ;;  %761 = vmatpush.msrb.mxu0 %v217_v14  ;;  %v371_v13 = vld [vmem:[#allocation5 + $0x898] sm:$0xff]  ;;  %v289_v14 = vld [vmem:[#allocation5 + $0x608] sm:$0xff] }
  0x62   :  { %710 = vmatpush.msra.mxu2 %v135_v15  ;;  %723 = vmatpush.msra.mxu1 %v342_v16  ;;  %v415_v15 = vld [vmem:[#allocation5 + $0x9f8] sm:$0xff]  ;;  %v209_v16 = vld [vmem:[#allocation5 + $0x388] sm:$0xff] }
  0x63   :  { %674 = vmatpush.msrb.mxu3 %v242_v17  ;;  %762 = vmatpush.msrb.mxu0 %v208_v18  ;;  %v362_v17 = vld [vmem:[#allocation5 + $0x850] sm:$0xff]  ;;  %v280_v18 = vld [vmem:[#allocation5 + $0x5c0] sm:$0xff] }
  0x64   :  { %711 = vmatpush.msra.mxu2 %v126_v19  ;;  %724 = vmatpush.msra.mxu1 %v333_v20  ;;  %v406_v19 = vld [vmem:[#allocation5 + $0x9b0] sm:$0xff]  ;;  %v200_v20 = vld [vmem:[#allocation5 + $0x340] sm:$0xff] }
  0x65   :  { %1423 = vmatpush.msk.msra.mxu3 %vm491_vm0, %v459_v21  ;;  %763 = vmatpush.msrb.mxu0 %v199_v22  ;;  %v353_v21 = vld [vmem:[#allocation5 + $0x808] sm:$0xff]  ;;  %v271_v22 = vld [vmem:[#allocation5 + $0x578] sm:$0xff] }
  0x66   :  { %712 = vmatpush.msra.mxu2 %v117_v23  ;;  %725 = vmatpush.msra.mxu1 %v324_v24  ;;  %v397_v23 = vld [vmem:[#allocation5 + $0x968] sm:$0xff]  ;;  %v191_v24 = vld [vmem:[#allocation5 + $0x2f8] sm:$0xff] }
  0x67   :  { %747 = vmatpush.msra.mxu3 %v450_v25  ;;  %764 = vmatpush.msrb.mxu0 %v190_v26  ;;  %v344_v25 = vld [vmem:[#allocation5 + $0x7c0] sm:$0xff]  ;;  %v262_v26 = vld [vmem:[#allocation5 + $0x530] sm:$0xff] }
  0x68   :  { %713 = vmatpush.msra.mxu2 %v108_v27  ;;  %726 = vmatpush.msra.mxu1 %v315_v28  ;;  %v388_v27 = vld [vmem:[#allocation5 + $0x920] sm:$0xff]  ;;  %v182_v28 = vld [vmem:[#allocation5 + $0x2b0] sm:$0xff] }
  0x69   :  { %748 = vmatpush.msra.mxu3 %v441_v29  ;;  %765 = vmatpush.msrb.mxu0 %v181_v30  ;;  %v335_v29 = vld [vmem:[#allocation5 + $0x778] sm:$0xff]  ;;  %v461_v30 = vld [vmem:[#allocation5 + $0xb68] sm:$0xf] }
  0x6a   :  { %714 = vmatpush.msra.mxu2 %v99_v33  ;;  %727 = vmatpush.msra.mxu1 %v306_v34  ;;  %v253_v33 = vld [vmem:[#allocation5 + $0x4e8] sm:$0xff] }
  0x6b   :  { %749 = vmatpush.msra.mxu3 %v432_v35  ;;  %766 = vmatpush.msrb.mxu0 %v172_v36  ;;  %v173_v34 = vld [vmem:[#allocation5 + $0x268] sm:$0xff]  ;;  %v326_v35 = vld [vmem:[#allocation5 + $0x730] sm:$0xff]  ;;  %v452_v36 = vld [vmem:[#allocation5 + $0xb20] sm:$0xff] }
  0x6c   :  { %779 = vmatpush.msrb.mxu2 %v379_v37  ;;  %728 = vmatpush.msra.mxu1 %v297_v38  ;;  %v244_v37 = vld [vmem:[#allocation5 + $0x4a0] sm:$0xff] }
  0x6d   :  { %750 = vmatpush.msra.mxu3 %v423_v39  ;;  %767 = vmatpush.msrb.mxu0 %v163_v40  ;;  %v164_v38 = vld [vmem:[#allocation5 + $0x220] sm:$0xff]  ;;  %v317_v39 = vld [vmem:[#allocation5 + $0x6e8] sm:$0xff]  ;;  %v443_v40 = vld [vmem:[#allocation5 + $0xad8] sm:$0xff] }
  0x6e   :  { %780 = vmatpush.msrb.mxu2 %v370_v42  ;;  %729 = vmatpush.msra.mxu1 %v288_v43  ;;  %v237_v42 = vld [vmem:[#allocation5 + $0x468] sm:$0xff]  ;;  %v155_v43 = vld [vmem:[#allocation5 + $0x1d8] sm:$0xff] }
  0x6f   :  { %751 = vmatpush.msra.mxu3 %v414_v44  ;;  %768 = vmatpush.msrb.mxu0 %v154_v45  ;;  %v308_v44 = vld [vmem:[#allocation5 + $0x6a0] sm:$0xff]  ;;  %v434_v45 = vld [vmem:[#allocation5 + $0xa90] sm:$0xff] }
  0x70   :  { %781 = vmatpush.msrb.mxu2 %v361_v46  ;;  %730 = vmatpush.msra.mxu1 %v279_v47  ;;  %v228_v46 = vld [vmem:[#allocation5 + $0x420] sm:$0xff]  ;;  %v146_v47 = vld [vmem:[#allocation5 + $0x190] sm:$0xff] }
  0x71   :  { %752 = vmatpush.msra.mxu3 %v405_v48  ;;  %769 = vmatpush.msrb.mxu0 %v145_v49  ;;  %v425_v48 = vld [vmem:[#allocation5 + $0xa48] sm:$0xff]  ;;  %v299_v49 = vld [vmem:[#allocation5 + $0x658] sm:$0xff] }
  0x72   :  { %782 = vmatpush.msrb.mxu2 %v352_v50  ;;  %731 = vmatpush.msra.mxu1 %v270_v51  ;;  %v219_v50 = vld [vmem:[#allocation5 + $0x3d8] sm:$0xff]  ;;  %v137_v51 = vld [vmem:[#allocation5 + $0x148] sm:$0xff] }
  0x73   :  { %753 = vmatpush.msra.mxu3 %v396_v52  ;;  %770 = vmatpush.msrb.mxu0 %v136_v53  ;;  %v416_v52 = vld [vmem:[#allocation5 + $0xa00] sm:$0xff]  ;;  %v290_v53 = vld [vmem:[#allocation5 + $0x610] sm:$0xff] }
  0x74   :  { %675 = vmatmul.f32.vlgmr.msrb.gmra.mxu3 %v1667_v41  ;;  %783 = vmatpush.msrb.mxu2 %v343_v54  ;;  %v210_v54 = vld [vmem:[#allocation5 + $0x390] sm:$0xff] }
  0x75   :  { %732 = vmatpush.msra.mxu1 %v261_v55  ;;  %754 = vmatpush.msra.mxu3 %v387_v56  ;;  %v128_v55 = vld [vmem:[#allocation5 + $0x100] sm:$0xff]  ;;  %v407_v56 = vld [vmem:[#allocation5 + $0x9b8] sm:$0xff] }
  0x76   :  { %771 = vmatpush.msrb.mxu0 %v127_v57  ;;  %784 = vmatpush.msrb.mxu2 %v334_v58  ;;  %v281_v57 = vld [vmem:[#allocation5 + $0x5c8] sm:$0xff] }
  0x77   :  { %1425 = vmatpush.msk.msrb.mxu3 %vm491_vm0, %v460_v59  ;;  %733 = vmatpush.msra.mxu1 %v252_v60  ;;  %v201_v58 = vld [vmem:[#allocation5 + $0x348] sm:$0xff]  ;;  %v119_v59 = vld [vmem:[#allocation5 + $0xb8] sm:$0xff]  ;;  %v398_v60 = vld [vmem:[#allocation5 + $0x970] sm:$0xff] }
  0x78   :  { %772 = vmatpush.msrb.mxu0 %v118_v61  ;;  %655 = vmatmul.f32.vlgmr.msrb.gmra.mxu1 %v1659_v31  ;;  %v272_v61 = vld [vmem:[#allocation5 + $0x580] sm:$0xff] }
  0x79   :  { %785 = vmatpush.msrb.mxu2 %v325_v62  ;;  %807 = vmatpush.msrb.mxu3 %v451_v63  ;;  %v192_v62 = vld [vmem:[#allocation5 + $0x300] sm:$0xff]  ;;  %v110_v63 = vld [vmem:[#allocation5 + $0x70] sm:$0xff] }
  0x7a   :  { %734 = vmatpush.msra.mxu1 %v243_v0  ;;  %715 = vmatmul.f32.vlgmr.msra.gmra.mxu2 %v1659_v31  ;;  %v389_v0 = vld [vmem:[#allocation5 + $0x928] sm:$0xff] }
  0x7b   :  { %773 = vmatpush.msrb.mxu0 %v109_v1  ;;  %786 = vmatpush.msrb.mxu2 %v316_v2  ;;  %v263_v1 = vld [vmem:[#allocation5 + $0x538] sm:$0xff] }
  0x7c   :  { %808 = vmatpush.msrb.mxu3 %v442_v3  ;;  %819 = vmatpush.msrb.mxu1 %v236_v4  ;;  %v183_v2 = vld [vmem:[#allocation5 + $0x2b8] sm:$0xff]  ;;  %v101_v3 = vld [vmem:[#allocation5 + $0x28] sm:$0xff]  ;;  %v254_v4 = vld [vmem:[#allocation5 + $0x4f0] sm:$0xff] }
  0x7d   :  { %1422 = vmatmul.msk.f32.vlgmr.msra.gmra.mxu0 %vm487_vm1, %v1661_v32  ;;  %787 = vmatpush.msrb.mxu2 %v307_v6  ;;  %v382_v6 = vld [vmem:[#allocation5 + $0x8f0] sm:$0xff] }
  0x7e   :  { %774 = vmatpush.msrb.mxu0 %v100_v5  ;;  %809 = vmatpush.msrb.mxu3 %v433_v7  ;;  %v174_v5 = vld [vmem:[#allocation5 + $0x270] sm:$0xff]  ;;  %v381_v7 = vld [vmem:[#allocation5 + $0x8e8] sm:$0xff] }
  0x7f   :  { %820 = vmatpush.msrb.mxu1 %v227_v8  ;;  %1424 = vmatmul.msk.f32.vlgmr.msra.gmra.mxu3 %vm487_vm1, %v1661_v32  ;;  %v245_v8 = vld [vmem:[#allocation5 + $0x4a8] sm:$0xff] }
  0x80   :  { %839 = vmatpush.msra.mxu0 %v380_v9  ;;  %788 = vmatpush.msrb.mxu2 %v298_v10  ;;  %v165_v9 = vld [vmem:[#allocation5 + $0x228] sm:$0xff] }
  0x81   :  { %810 = vmatpush.msrb.mxu3 %v424_v11  ;;  %821 = vmatpush.msrb.mxu1 %v218_v12  ;;  %v373_v10 = vld [vmem:[#allocation5 + $0x8a8] sm:$0xff]  ;;  %v372_v11 = vld [vmem:[#allocation5 + $0x8a0] sm:$0xff] }
  0x82   :  { %840 = vmatpush.msra.mxu0 %v371_v13  ;;  %789 = vmatpush.msrb.mxu2 %v289_v14  ;;  %v156_v12 = vld [vmem:[#allocation5 + $0x1e0] sm:$0xff]  ;;  %v363_v14 = vld [vmem:[#allocation5 + $0x858] sm:$0xff] }
  0x83   :  { %811 = vmatpush.msrb.mxu3 %v415_v15  ;;  %822 = vmatpush.msrb.mxu1 %v209_v16  ;;  %v364_v13 = vld [vmem:[#allocation5 + $0x860] sm:$0xff]  ;;  %v238_v15 = vld [vmem:[#allocation5 + $0x470] sm:$0xff]  ;;  %v147_v16 = vld [vmem:[#allocation5 + $0x198] sm:$0xff] }
  0x84   :  { %841 = vmatpush.msra.mxu0 %v362_v17  ;;  %735 = vmatmul.f32.vlgmr.msra.gmra.mxu1 %v1667_v41  ;;  %v355_v17 = vld [vmem:[#allocation5 + $0x818] sm:$0xff] }
  0x85   :  { %790 = vmatpush.msrb.mxu2 %v280_v18  ;;  %812 = vmatpush.msrb.mxu3 %v406_v19  ;;  %v354_v18 = vld [vmem:[#allocation5 + $0x810] sm:$0xff]  ;;  %v229_v19 = vld [vmem:[#allocation5 + $0x428] sm:$0xff] }
  0x86   :  { %823 = vmatpush.msrb.mxu1 %v200_v20  ;;  %842 = vmatpush.msra.mxu0 %v353_v21  ;;  %v138_v20 = vld [vmem:[#allocation5 + $0x150] sm:$0xff] }
  0x87   :  { %791 = vmatpush.msrb.mxu2 %v271_v22  ;;  %813 = vmatpush.msrb.mxu3 %v397_v23  ;;  %v346_v21 = vld [vmem:[#allocation5 + $0x7d0] sm:$0xff]  ;;  %v345_v22 = vld [vmem:[#allocation5 + $0x7c8] sm:$0xff]  ;;  %v220_v23 = vld [vmem:[#allocation5 + $0x3e0] sm:$0xff] }
  0x88   :  { %824 = vmatpush.msrb.mxu1 %v191_v24  ;;  %843 = vmatpush.msra.mxu0 %v344_v25  ;;  %v129_v24 = vld [vmem:[#allocation5 + $0x108] sm:$0xff] }
  0x89   :  { %792 = vmatpush.msrb.mxu2 %v262_v26  ;;  %814 = vmatpush.msrb.mxu3 %v388_v27  ;;  %v337_v25 = vld [vmem:[#allocation5 + $0x788] sm:$0xff]  ;;  %v336_v26 = vld [vmem:[#allocation5 + $0x780] sm:$0xff]  ;;  %v211_v27 = vld [vmem:[#allocation5 + $0x398] sm:$0xff] }
  0x8a   :  { %825 = vmatpush.msrb.mxu1 %v182_v28  ;;  %844 = vmatpush.msra.mxu0 %v335_v29  ;;  %v120_v28 = vld [vmem:[#allocation5 + $0xc0] sm:$0xff] }
  0x8b   :  { %1427 = vmatpush.msk.msra.mxu3 %vm491_vm0, %v461_v30  ;;  %793 = vmatpush.msrb.mxu2 %v253_v33  ;;  %v328_v29 = vld [vmem:[#allocation5 + $0x740] sm:$0xff]  ;;  %v327_v30 = vld [vmem:[#allocation5 + $0x738] sm:$0xff]  ;;  %v202_v33 = vld [vmem:[#allocation5 + $0x350] sm:$0xff] }
  0x8c   :  { %826 = vmatpush.msrb.mxu1 %v173_v34  ;;  %845 = vmatpush.msra.mxu0 %v326_v35  ;;  %v111_v34 = vld [vmem:[#allocation5 + $0x78] sm:$0xff] }
  0x8d   :  { %867 = vmatpush.msra.mxu3 %v452_v36  ;;  %794 = vmatpush.msrb.mxu2 %v244_v37  ;;  %v319_v35 = vld [vmem:[#allocation5 + $0x6f8] sm:$0xff]  ;;  %v318_v36 = vld [vmem:[#allocation5 + $0x6f0] sm:$0xff]  ;;  %v193_v37 = vld [vmem:[#allocation5 + $0x308] sm:$0xff] }
  0x8e   :  { %827 = vmatpush.msrb.mxu1 %v164_v38  ;;  %795 = vmatmul.f32.vlgmr.msrb.gmra.mxu2 %v1667_v41  ;;  %v102_v38 = vld [vmem:[#allocation5 + $0x30] sm:$0xff] }
  0x8f   :  { %846 = vmatpush.msra.mxu0 %v317_v39  ;;  %868 = vmatpush.msra.mxu3 %v443_v40  ;;  %v310_v39 = vld [vmem:[#allocation5 + $0x6b0] sm:$0xff]  ;;  %v309_v40 = vld [vmem:[#allocation5 + $0x6a8] sm:$0xff] }
  0x90   :  { %879 = vmatpush.msra.mxu2 %v237_v42  ;;  %828 = vmatpush.msrb.mxu1 %v155_v43  ;;  %v462_v42 = vld [vmem:[#allocation5 + $0xb70] sm:$0xf]  ;;  %v301_v43 = vld [vmem:[#allocation5 + $0x668] sm:$0xff] }
  0x91   :  { %1426 = vmatmul.msk.f32.vlgmr.msrb.gmra.mxu3 %vm487_vm1, %v1661_v32  ;;  %847 = vmatpush.msra.mxu0 %v308_v44  ;;  %v184_v44 = vld [vmem:[#allocation5 + $0x2c0] sm:$0xff] }
  0x92   :  { %869 = vmatpush.msra.mxu3 %v434_v45  ;;  %880 = vmatpush.msra.mxu2 %v228_v46  ;;  %v300_v45 = vld [vmem:[#allocation5 + $0x660] sm:$0xff]  ;;  %v453_v46 = vld [vmem:[#allocation5 + $0xb28] sm:$0xff] }
  0x93   :  { %829 = vmatpush.msrb.mxu1 %v146_v47  ;;  %775 = vmatmul.f32.vlgmr.msrb.gmra.mxu0 %v1659_v31  ;;  %v292_v47 = vld [vmem:[#allocation5 + $0x620] sm:$0xff] }
  0x94   :  { %870 = vmatpush.msra.mxu3 %v425_v48  ;;  %848 = vmatpush.msra.mxu0 %v299_v49  ;;  %v175_v48 = vld [vmem:[#allocation5 + $0x278] sm:$0xff] }
  0x95   :  { %881 = vmatpush.msra.mxu2 %v219_v50  ;;  %830 = vmatpush.msrb.mxu1 %v137_v51  ;;  %v291_v49 = vld [vmem:[#allocation5 + $0x618] sm:$0xff]  ;;  %v444_v50 = vld [vmem:[#allocation5 + $0xae0] sm:$0xff] }
  0x96   :  { %871 = vmatpush.msra.mxu3 %v416_v52  ;;  %849 = vmatpush.msra.mxu0 %v290_v53  ;;  %v283_v51 = vld [vmem:[#allocation5 + $0x5d8] sm:$0xff]  ;;  %v282_v52 = vld [vmem:[#allocation5 + $0x5d0] sm:$0xff] }
  0x97   :  { %882 = vmatpush.msra.mxu2 %v210_v54  ;;  %831 = vmatpush.msrb.mxu1 %v128_v55  ;;  %v435_v53 = vld [vmem:[#allocation5 + $0xa98] sm:$0xff]  ;;  %v274_v54 = vld [vmem:[#allocation5 + $0x590] sm:$0xff] }
  0x98   :  { %872 = vmatpush.msra.mxu3 %v407_v56  ;;  %850 = vmatpush.msra.mxu0 %v281_v57  ;;  %v166_v55 = vld [vmem:[#allocation5 + $0x230] sm:$0xff]  ;;  %v273_v56 = vld [vmem:[#allocation5 + $0x588] sm:$0xff] }
  0x99   :  { %883 = vmatpush.msra.mxu2 %v201_v58  ;;  %832 = vmatpush.msrb.mxu1 %v119_v59  ;;  %v426_v57 = vld [vmem:[#allocation5 + $0xa50] sm:$0xff]  ;;  %v265_v58 = vld [vmem:[#allocation5 + $0x548] sm:$0xff] }
  0x9a   :  { %873 = vmatpush.msra.mxu3 %v398_v60  ;;  %851 = vmatpush.msra.mxu0 %v272_v61  ;;  %v157_v59 = vld [vmem:[#allocation5 + $0x1e8] sm:$0xff]  ;;  %v264_v60 = vld [vmem:[#allocation5 + $0x540] sm:$0xff] }
  0x9b   :  { %884 = vmatpush.msra.mxu2 %v192_v62  ;;  %833 = vmatpush.msrb.mxu1 %v110_v63  ;;  %v417_v61 = vld [vmem:[#allocation5 + $0xa08] sm:$0xff]  ;;  %v256_v62 = vld [vmem:[#allocation5 + $0x500] sm:$0xff] }
  0x9c   :  { %874 = vmatpush.msra.mxu3 %v389_v0  ;;  %852 = vmatpush.msra.mxu0 %v263_v1  ;;  %v148_v63 = vld [vmem:[#allocation5 + $0x1a0] sm:$0xff]  ;;  %v255_v0 = vld [vmem:[#allocation5 + $0x4f8] sm:$0xff] }
  0x9d   :  { %885 = vmatpush.msra.mxu2 %v183_v2  ;;  %834 = vmatpush.msrb.mxu1 %v101_v3  ;;  %v408_v1 = vld [vmem:[#allocation5 + $0x9c0] sm:$0xff]  ;;  %v247_v2 = vld [vmem:[#allocation5 + $0x4b8] sm:$0xff]  ;;  %v246_v3 = vld [vmem:[#allocation5 + $0x4b0] sm:$0xff] }
  0x9e   :  { %1428 = vmatmul.msk.f32.vlgmr.msra.gmra.mxu3 %vm487_vm1, %v1661_v32  ;;  %853 = vmatpush.msra.mxu0 %v254_v4  ;;  %v399_v4 = vld [vmem:[#allocation5 + $0x978] sm:$0xff] }
  0x9f   :  { %886 = vmatpush.msra.mxu2 %v174_v5  ;;  %959 = vmatpush.msra.mxu1 %v382_v6  ;;  %v1083_v5 = vld [vmem:[#allocation8 + $0x78] sm:$0xff] }
  0xa0   :  { %899 = vmatpush.msrb.mxu3 %v381_v7  ;;  %835 = vmatmul.f32.vlgmr.msrb.gmra.mxu1 %v1659_v31  ;;  %v390_v6 = vld [vmem:[#allocation5 + $0x930] sm:$0xff]  ;;  %v239_v7 = vld [vmem:[#allocation5 + $0x478] sm:$0xff] }
  0xa1   :  { %854 = vmatpush.msra.mxu0 %v245_v8  ;;  %887 = vmatpush.msra.mxu2 %v165_v9  ;;  %v1082_v8 = vld [vmem:[#allocation8 + $0x70] sm:$0xff]  ;;  %v130_v9 = vld [vmem:[#allocation5 + $0x110] sm:$0xff] }
  0xa2   :  { %960 = vmatpush.msra.mxu1 %v373_v10  ;;  %855 = vmatmul.f32.vlgmr.msra.gmra.mxu0 %v1667_v41  ;;  %v463_v10 = vld [vmem:[#allocation5 + $0xb78] sm:$0xf] }
  0xa3   :  { %900 = vmatpush.msrb.mxu3 %v372_v11  ;;  %888 = vmatpush.msra.mxu2 %v156_v12  ;;  %v230_v11 = vld [vmem:[#allocation5 + $0x430] sm:$0xff]  ;;  %v1081_v12 = vld [vmem:[#allocation8 + $0x68] sm:$0xff] }
  0xa4   :  { %961 = vmatpush.msra.mxu1 %v364_v13  ;;  %939 = vmatpush.msrb.mxu0 %v238_v15  ;;  %v121_v13 = vld [vmem:[#allocation5 + $0xc8] sm:$0xff] }
  0xa5   :  { %901 = vmatpush.msrb.mxu3 %v363_v14  ;;  %889 = vmatpush.msra.mxu2 %v147_v16  ;;  %v454_v14 = vld [vmem:[#allocation5 + $0xb30] sm:$0xff]  ;;  %v221_v15 = vld [vmem:[#allocation5 + $0x3e8] sm:$0xff] }
  0xa6   :  { %962 = vmatpush.msra.mxu1 %v355_v17  ;;  %940 = vmatpush.msrb.mxu0 %v229_v19  ;;  %v1080_v16 = vld [vmem:[#allocation8 + $0x60] sm:$0xff]  ;;  %v445_v17 = vld [vmem:[#allocation5 + $0xae8] sm:$0xff] }
  0xa7   :  { %902 = vmatpush.msrb.mxu3 %v354_v18  ;;  %890 = vmatpush.msra.mxu2 %v138_v20  ;;  %v212_v18 = vld [vmem:[#allocation5 + $0x3a0] sm:$0xff]  ;;  %v1079_v19 = vld [vmem:[#allocation8 + $0x58] sm:$0xff]  ;;  %v103_v20 = vld [vmem:[#allocation5 + $0x38] sm:$0xff] }
  0xa8   :  { %963 = vmatpush.msra.mxu1 %v346_v21  ;;  %941 = vmatpush.msrb.mxu0 %v220_v23  ;;  %v436_v21 = vld [vmem:[#allocation5 + $0xaa0] sm:$0xff] }
  0xa9   :  { %903 = vmatpush.msrb.mxu3 %v345_v22  ;;  %891 = vmatpush.msra.mxu2 %v129_v24  ;;  %v383_v22 = vld [vmem:[#allocation5 + $0x8f8] sm:$0xff]  ;;  %v1078_v23 = vld [vmem:[#allocation8 + $0x50] sm:$0xff] }
  0xaa   :  { %964 = vmatpush.msra.mxu1 %v337_v25  ;;  %942 = vmatpush.msrb.mxu0 %v211_v27  ;;  %v427_v24 = vld [vmem:[#allocation5 + $0xa58] sm:$0xff]  ;;  %v194_v25 = vld [vmem:[#allocation5 + $0x310] sm:$0xff] }
  0xab   :  { %904 = vmatpush.msrb.mxu3 %v336_v26  ;;  %892 = vmatpush.msra.mxu2 %v120_v28  ;;  %v374_v26 = vld [vmem:[#allocation5 + $0x8b0] sm:$0xff]  ;;  %v1077_v27 = vld [vmem:[#allocation8 + $0x48] sm:$0xff] }
  0xac   :  { %965 = vmatpush.msra.mxu1 %v328_v29  ;;  %943 = vmatpush.msrb.mxu0 %v202_v33  ;;  %v418_v28 = vld [vmem:[#allocation5 + $0xa10] sm:$0xff]  ;;  %v185_v29 = vld [vmem:[#allocation5 + $0x2c8] sm:$0xff] }
  0xad   :  { %905 = vmatpush.msrb.mxu3 %v327_v30  ;;  %893 = vmatpush.msra.mxu2 %v111_v34  ;;  %v365_v30 = vld [vmem:[#allocation5 + $0x868] sm:$0xff]  ;;  %v1076_v33 = vld [vmem:[#allocation8 + $0x40] sm:$0xff] }
  0xae   :  { %966 = vmatpush.msra.mxu1 %v319_v35  ;;  %944 = vmatpush.msrb.mxu0 %v193_v37  ;;  %v409_v34 = vld [vmem:[#allocation5 + $0x9c8] sm:$0xff]  ;;  %v176_v35 = vld [vmem:[#allocation5 + $0x280] sm:$0xff] }
  0xaf   :  { %906 = vmatpush.msrb.mxu3 %v318_v36  ;;  %894 = vmatpush.msra.mxu2 %v102_v38  ;;  %v356_v36 = vld [vmem:[#allocation5 + $0x820] sm:$0xff]  ;;  %v1699_v37 = vld [vmem:[#allocation7] sm:$0xff] }
  0xb0   :  { %967 = vmatpush.msra.mxu1 %v310_v39  ;;  %945 = vmatpush.msrb.mxu0 %v184_v44  ;;  %v1075_v38 = vld [vmem:[#allocation8 + $0x38] sm:$0xff]  ;;  %v400_v39 = vld [vmem:[#allocation5 + $0x980] sm:$0xff]  ;;  %v391_v44 = vld [vmem:[#allocation5 + $0x938] sm:$0xff] }
  0xb1   :  { %907 = vmatpush.msrb.mxu3 %v309_v40  ;;  %1429 = vmatpush.msk.msrb.mxu2 %vm491_vm0, %v462_v42  ;;  %v167_v40 = vld [vmem:[#allocation5 + $0x238] sm:$0xff] }
  0xb2   :  { %968 = vmatpush.msra.mxu1 %v301_v43  ;;  %946 = vmatpush.msrb.mxu0 %v175_v48  ;;  %v347_v42 = vld [vmem:[#allocation5 + $0x7d8] sm:$0xff]  ;;  %v1074_v43 = vld [vmem:[#allocation8 + $0x30] sm:$0xff]  ;;  %v338_v48 = vld [vmem:[#allocation5 + $0x790] sm:$0xff] }
  0xb3   :  { %908 = vmatpush.msrb.mxu3 %v300_v45  ;;  %927 = vmatpush.msrb.mxu2 %v453_v46  ;;  %v469_v45 = vperm.slane %v1699_v37, 0 }
  0xb4   :  { %969 = vmatpush.msra.mxu1 %v292_v47  ;;  %895 = vmatmul.f32.vlgmr.msra.gmra.mxu2 %v1659_v31  ;;  %v139_v31 = vld [vmem:[#allocation5 + $0x158] sm:$0xff]  ;;  %v158_v47 = vld [vmem:[#allocation5 + $0x1f0] sm:$0xff] }
  0xb5   :  { %909 = vmatpush.msrb.mxu3 %v291_v49  ;;  %928 = vmatpush.msrb.mxu2 %v444_v50  ;;  %v464_v49 = vld [vmem:[#allocation5 + $0xb80] sm:$0xf] }
  0xb6   :  { %970 = vmatpush.msra.mxu1 %v283_v51  ;;  %947 = vmatpush.msrb.mxu0 %v166_v55  ;;  %v1073_v50 = vld [vmem:[#allocation8 + $0x28] sm:$0xff] }
  0xb7   :  { %910 = vmatpush.msrb.mxu3 %v282_v52  ;;  %929 = vmatpush.msrb.mxu2 %v435_v53  ;;  %v1702_v52 = vld [vmem:[#allocation2 + $0x10] sm:$0xff]  ;;  %v149_v53 = vld [vmem:[#allocation5 + $0x1a8] sm:$0xff] }
  0xb8   :  { %971 = vmatpush.msra.mxu1 %v274_v54  ;;  %948 = vmatpush.msrb.mxu0 %v157_v59  ;;  %v329_v54 = vld [vmem:[#allocation5 + $0x748] sm:$0xff]  ;;  %v140_v59 = vld [vmem:[#allocation5 + $0x160] sm:$0xff] }
  0xb9   :  { %911 = vmatpush.msrb.mxu3 %v273_v56  ;;  %930 = vmatpush.msrb.mxu2 %v426_v57  ;;  %v455_v56 = vld [vmem:[#allocation5 + $0xb38] sm:$0xff] }
  0xba   :  { %972 = vmatpush.msra.mxu1 %v265_v58  ;;  %949 = vmatpush.msrb.mxu0 %v148_v63  ;;  %v1072_v57 = vld [vmem:[#allocation8 + $0x20] sm:$0xff]  ;;  %v1448_v58 = vld [vmem:[#allocation2] sm:$0xff] }
  0xbb   :  { %912 = vmatpush.msrb.mxu3 %v264_v60  ;;  %931 = vmatpush.msrb.mxu2 %v417_v61  ;;  %v320_v60 = vld [vmem:[#allocation5 + $0x700] sm:$0xff]  ;;  %v446_v61 = vld [vmem:[#allocation5 + $0xaf0] sm:$0xff] }
  0xbc   :  { %973 = vmatpush.msra.mxu1 %v256_v62  ;;  %950 = vmatpush.msrb.mxu0 %v139_v31  ;;  %v1071_v63 = vld [vmem:[#allocation8 + $0x18] sm:$0xff]  ;;  %v311_v31 = vld [vmem:[#allocation5 + $0x6b8] sm:$0xff] }
  0xbd   :  { %913 = vmatpush.msrb.mxu3 %v255_v0  ;;  %932 = vmatpush.msrb.mxu2 %v408_v1  ;;  %v131_v0 = vld [vmem:[#allocation5 + $0x118] sm:$0xff]  ;;  %v1707_v1 = vld [vmem:[#allocation2 + $0x8] sm:$0xff] }
  0xbe   :  { %974 = vmatpush.msra.mxu1 %v247_v2  ;;  %951 = vmatpush.msrb.mxu0 %v130_v9  ;;  %v1069_v9 = vld [vmem:[#allocation8 + $0x8] sm:$0xff] }
  0xbf   :  { %914 = vmatpush.msrb.mxu3 %v246_v3  ;;  %933 = vmatpush.msrb.mxu2 %v399_v4  ;;  %v437_v3 = vld [vmem:[#allocation5 + $0xaa8] sm:$0xff] }
  0xc0   :  { %1216 = vmatpush.msrb.mxu1 %v1083_v5  ;;  %915 = vmatmul.f32.vlgmr.msrb.gmra.mxu3 %v1667_v41  ;;  %v112_v41 = vld [vmem:[#allocation5 + $0x80] sm:$0xff]  ;;  %v122_v5 = vld [vmem:[#allocation5 + $0xd0] sm:$0xff] }
  0xc1   :  { %934 = vmatpush.msrb.mxu2 %v390_v6  ;;  %999 = vmatpush.msra.mxu3 %v239_v7  ;;  %v1070_v4 = vld [vmem:[#allocation8 + $0x10] sm:$0xff]  ;;  %v302_v6 = vld [vmem:[#allocation5 + $0x670] sm:$0xff] }
  0xc2   :  { %1217 = vmatpush.msrb.mxu1 %v1082_v8  ;;  %1430 = vmatmul.msk.f32.vlgmr.msrb.gmra.mxu2 %vm487_vm1, %v1661_v32  ;;  %v203_v32 = vld [vmem:[#allocation5 + $0x358] sm:$0xff]  ;;  %v536_v46 = vpop.f32.mrf.mxu0  ;;  %v428_v7 = vld [vmem:[#allocation5 + $0xa60] sm:$0xff] }
  0xc3   :  { %1431 = vmatpush.msk.msra.mxu2 %vm491_vm0, %v463_v10  ;;  %1000 = vmatpush.msra.mxu3 %v230_v11  ;;  %v537_v51 = vadd.f32 %v536_v46, %v469_v45  ;;  %v113_v10 = vld [vmem:[#allocation5 + $0x88] sm:$0xff] }
  0xc4   :  { %1218 = vmatpush.msrb.mxu1 %v1081_v12  ;;  %952 = vmatpush.msrb.mxu0 %v121_v13  ;;  %v293_v11 = vld [vmem:[#allocation5 + $0x628] sm:$0xff]  ;;  %v419_v12 = vld [vmem:[#allocation5 + $0xa18] sm:$0xff] }
  0xc5   :  { %987 = vmatpush.msra.mxu2 %v454_v14  ;;  %1001 = vmatpush.msra.mxu3 %v221_v15  ;;  %v1068_v13 = vld [vmem:[#allocation8] sm:$0xff]  ;;  %v104_v14 = vld [vmem:[#allocation5 + $0x40] sm:$0xff] }
  0xc6   :  { %1219 = vmatpush.msrb.mxu1 %v1080_v16  ;;  %953 = vmatpush.msrb.mxu0 %v112_v41  ;;  %v284_v15 = vld [vmem:[#allocation5 + $0x5e0] sm:$0xff]  ;;  %v410_v41 = vld [vmem:[#allocation5 + $0x9d0] sm:$0xff] }
  0xc7   :  { %988 = vmatpush.msra.mxu2 %v445_v17  ;;  %1002 = vmatpush.msra.mxu3 %v212_v18  ;;  %v275_v17 = vld [vmem:[#allocation5 + $0x598] sm:$0xff]  ;;  %v1115_v18 = vld [vmem:[#allocation8 + $0x178] sm:$0xff]  ;;  %v1142_v45 = vld [vmem:[#allocation8 + $0x250] sm:$0xff] }
  0xc8   :  { %1220 = vmatpush.msrb.mxu1 %v1079_v19  ;;  %954 = vmatpush.msrb.mxu0 %v103_v20  ;;  %v401_v19 = vld [vmem:[#allocation5 + $0x988] sm:$0xff] }
  0xc9   :  { %989 = vmatpush.msra.mxu2 %v436_v21  ;;  %1003 = vmatpush.msra.mxu3 %v203_v32  ;;  %v1147_v20 = vld [vmem:[#allocation8 + $0x278] sm:$0xff]  ;;  %v1114_v32 = vld [vmem:[#allocation8 + $0x170] sm:$0xff] }
  0xca   :  { %1019 = vmatpush.msra.mxu0 %v383_v22  ;;  %1221 = vmatpush.msrb.mxu1 %v1078_v23  ;;  %v576_v2 = vpop.f32.mrf.mxu2  ;;  %v266_v21 = vld [vmem:[#allocation5 + $0x550] sm:$0xff]  ;;  %v392_v22 = vld [vmem:[#allocation5 + $0x940] sm:$0xff] }
  0xcb   :  { %990 = vmatpush.msra.mxu2 %v427_v24  ;;  %1004 = vmatpush.msra.mxu3 %v194_v25  ;;  %v556_v55 = vpop.f32.mrf.mxu1  ;;  %v1146_v23 = vld [vmem:[#allocation8 + $0x270] sm:$0xff]  ;;  %v1099_v25 = vld [vmem:[#allocation8 + $0xf8] sm:$0xff] }
  0xcc   :  { %1020 = vmatpush.msra.mxu0 %v374_v26  ;;  %1222 = vmatpush.msrb.mxu1 %v1077_v27  ;;  %v557_v62 = vadd.f32 %v556_v55, %v537_v51  ;;  %v257_v24 = vld [vmem:[#allocation5 + $0x508] sm:$0xff]  ;;  %v1113_v26 = vld [vmem:[#allocation8 + $0x168] sm:$0xff]  ;;  %v1108_v51 = vld [vmem:[#allocation8 + $0x140] sm:$0xff] }
  0xcd   :  { %991 = vmatpush.msra.mxu2 %v418_v28  ;;  %1005 = vmatpush.msra.mxu3 %v185_v29  ;;  %v248_v27 = vld [vmem:[#allocation5 + $0x4c0] sm:$0xff]  ;;  %v1140_v55 = vld [vmem:[#allocation8 + $0x240] sm:$0xff] }
  0xce   :  { %1021 = vmatpush.msra.mxu0 %v365_v30  ;;  %1223 = vmatpush.msrb.mxu1 %v1076_v33  ;;  %v577_v8 = vadd.f32 %v576_v2, %v557_v62  ;;  %v1145_v28 = vld [vmem:[#allocation8 + $0x268] sm:$0xff]  ;;  %v1098_v29 = vld [vmem:[#allocation8 + $0xf0] sm:$0xff]  ;;  %v1112_v30 = vld [vmem:[#allocation8 + $0x160] sm:$0xff] }
  0xcf   :  { %992 = vmatpush.msra.mxu2 %v409_v34  ;;  %1006 = vmatpush.msra.mxu3 %v176_v35  ;;  %v1131_v33 = vld [vmem:[#allocation8 + $0x1f8] sm:$0xff]  ;;  %v1097_v34 = vld [vmem:[#allocation8 + $0xe8] sm:$0xff]  ;;  %v1144_v35 = vld [vmem:[#allocation8 + $0x260] sm:$0xff] }
  0xd0   :  { %1022 = vmatpush.msra.mxu0 %v356_v36  ;;  %1224 = vmatpush.msrb.mxu1 %v1075_v38  ;;  %v1059_v16 = vmax.f32 %v577_v8, 0.0  ;;  %v1111_v36 = vld [vmem:[#allocation8 + $0x158] sm:$0xff]  ;;  %v1130_v38 = vld [vmem:[#allocation8 + $0x1f0] sm:$0xff]  ;;  %v1125_v62 = vld [vmem:[#allocation8 + $0x1c8] sm:$0xff] }
  0xd1   :  { %993 = vmatpush.msra.mxu2 %v400_v39  ;;  %1007 = vmatpush.msra.mxu3 %v167_v40  ;;  %v1096_v39 = vld [vmem:[#allocation8 + $0xe0] sm:$0xff]  ;;  %v1143_v40 = vld [vmem:[#allocation8 + $0x258] sm:$0xff]  ;;  %v1137_v8 = vld [vmem:[#allocation8 + $0x228] sm:$0xff] }
  0xd2   :  { %1023 = vmatpush.msra.mxu0 %v347_v42  ;;  %1225 = vmatpush.msrb.mxu1 %v1074_v43  ;;  %v1110_v42 = vld [vmem:[#allocation8 + $0x150] sm:$0xff]  ;;  %v1129_v43 = vld [vmem:[#allocation8 + $0x1e8] sm:$0xff] }
  0xd3   :  { %994 = vmatpush.msra.mxu2 %v391_v44  ;;  %1008 = vmatpush.msra.mxu3 %v158_v47  ;;  %v1095_v44 = vld [vmem:[#allocation8 + $0xd8] sm:$0xff]  ;;  %v1109_v47 = vld [vmem:[#allocation8 + $0x148] sm:$0xff] }
  0xd4   :  { %1432 = vmatmul.msk.f32.vlgmr.msra.gmra.mxu2 %vm487_vm1, %v1702_v52  ;;  %1024 = vmatpush.msra.mxu0 %v338_v48  ;;  %v1128_v48 = vld [vmem:[#allocation8 + $0x1e0] sm:$0xff] }
  0xd5   :  { %1433 = vmatpush.msk.msrb.mxu2 %vm491_vm0, %v464_v49  ;;  %1226 = vmatpush.msrb.mxu1 %v1073_v50  ;;  %v1094_v49 = vld [vmem:[#allocation8 + $0xd0] sm:$0xff]  ;;  %v1141_v50 = vld [vmem:[#allocation8 + $0x248] sm:$0xff] }
  0xd6   :  { %955 = vmatmul.f32.vlgmr.msrb.gmra.mxu0 %v1448_v58  ;;  %1009 = vmatpush.msra.mxu3 %v149_v53 }
  0xd7   :  { %1025 = vmatpush.msra.mxu0 %v329_v54  ;;  %1047 = vmatpush.msrb.mxu2 %v455_v56  ;;  %v1093_v54 = vld [vmem:[#allocation8 + $0xc8] sm:$0xff]  ;;  %v1107_v56 = vld [vmem:[#allocation8 + $0x138] sm:$0xff] }
  0xd8   :  { %1227 = vmatpush.msrb.mxu1 %v1072_v57  ;;  %1010 = vmatpush.msra.mxu3 %v140_v59  ;;  %v1126_v57 = vld [vmem:[#allocation8 + $0x1d0] sm:$0xff]  ;;  %v1092_v59 = vld [vmem:[#allocation8 + $0xc0] sm:$0xff] }
  0xd9   :  { %975 = vmatmul.f32.vlgmr.msra.gmra.mxu1 %v1707_v1  ;;  %1026 = vmatpush.msra.mxu0 %v320_v60  ;;  %v1713_v53 = vpop.f32.mrf.mxu0  ;;  %v1139_v60 = vld [vmem:[#allocation8 + $0x238] sm:$0xff] }
  0xda   :  { %1048 = vmatpush.msrb.mxu2 %v446_v61  ;;  %1228 = vmatpush.msrb.mxu1 %v1071_v63  ;;  %v1106_v61 = vld [vmem:[#allocation8 + $0x130] sm:$0xff]  ;;  %v470_v63 = vperm.slane %v1699_v37, 1 }
  0xdb   :  { %1011 = vmatpush.msra.mxu3 %v131_v0  ;;  %1027 = vmatpush.msra.mxu0 %v311_v31  ;;  %v596_v46 = vpop.f32.mrf.mxu3  ;;  %v1138_v31 = vld [vmem:[#allocation8 + $0x230] sm:$0xff] }
  0xdc   :  { %1049 = vmatpush.msrb.mxu2 %v437_v3  ;;  %1229 = vmatpush.msrb.mxu1 %v1070_v4  ;;  %v1105_v3 = vld [vmem:[#allocation8 + $0x128] sm:$0xff] }
  0xdd   :  { %1012 = vmatpush.msra.mxu3 %v122_v5  ;;  %1028 = vmatpush.msra.mxu0 %v302_v6  ;;  %v616_v0 = vpop.f32.mrf.mxu2  ;;  %v1124_v5 = vld [vmem:[#allocation8 + $0x1c0] sm:$0xff] }
  0xde   :  { %1050 = vmatpush.msrb.mxu2 %v428_v7  ;;  %1230 = vmatpush.msrb.mxu1 %v1069_v9  ;;  %v1090_v7 = vld [vmem:[#allocation8 + $0xb0] sm:$0xff]  ;;  %v1104_v9 = vld [vmem:[#allocation8 + $0x120] sm:$0xff] }
  0xdf   :  { %1013 = vmatpush.msra.mxu3 %v113_v10  ;;  %1029 = vmatpush.msra.mxu0 %v293_v11  ;;  %v1123_v11 = vld [vmem:[#allocation8 + $0x1b8] sm:$0xff] }
  0xe0   :  { %1051 = vmatpush.msrb.mxu2 %v419_v12  ;;  %1231 = vmatpush.msrb.mxu1 %v1068_v13  ;;  %v597_v12 = vadd.f32 %v596_v46, %v470_v63  ;;  %v1089_v13 = vld [vmem:[#allocation8 + $0xa8] sm:$0xff]  ;;  %v1158_v63 = vld [vmem:[#allocation8 + $0x2d0] sm:$0xff] }
  0xe1   :  { %1014 = vmatpush.msra.mxu3 %v104_v14  ;;  %1232 = vmatmul.f32.vlgmr.msrb.gmra.mxu1 %v1059_v16  ;;  %v1103_v16 = vld [vmem:[#allocation8 + $0x118] sm:$0xff] }
  0xe2   :  { %1030 = vmatpush.msra.mxu0 %v284_v15  ;;  %1052 = vmatpush.msrb.mxu2 %v410_v41  ;;  %v1136_v15 = vld [vmem:[#allocation8 + $0x220] sm:$0xff]  ;;  %v1122_v41 = vld [vmem:[#allocation8 + $0x1b0] sm:$0xff] }
  0xe3   :  { %1015 = vmatmul.f32.vlgmr.msra.gmra.mxu3 %v1448_v58  ;;  %1296 = vmatpush.msra.mxu1 %v1147_v20  ;;  %v471_v58 = vperm.slane %v1699_v37, 2 }
  0xe4   :  { %1031 = vmatpush.msra.mxu0 %v275_v17  ;;  %1256 = vmatpush.msrb.mxu3 %v1115_v18  ;;  %v472_v17 = vperm.slane %v1699_v37, 3  ;;  %v1088_v18 = vld [vmem:[#allocation8 + $0xa0] sm:$0xff] }
  0xe5   :  { %1053 = vmatpush.msrb.mxu2 %v401_v19  ;;  %1297 = vmatpush.msra.mxu1 %v1146_v23  ;;  %v1135_v19 = vld [vmem:[#allocation8 + $0x218] sm:$0xff] }
  0xe6   :  { %1032 = vmatpush.msra.mxu0 %v266_v21  ;;  %1257 = vmatpush.msrb.mxu3 %v1114_v32  ;;  %v1102_v21 = vld [vmem:[#allocation8 + $0x110] sm:$0xff]  ;;  %v1121_v32 = vld [vmem:[#allocation8 + $0x1a8] sm:$0xff]  ;;  %v1087_v23 = vld [vmem:[#allocation8 + $0x98] sm:$0xff] }
  0xe7   :  { %1054 = vmatpush.msrb.mxu2 %v392_v22  ;;  %1298 = vmatpush.msra.mxu1 %v1145_v28  ;;  %v617_v22 = vadd.f32 %v616_v0, %v597_v12  ;;  %v1120_v28 = vld [vmem:[#allocation8 + $0x1a0] sm:$0xff] }
  0xe8   :  { %1434 = vmatmul.msk.f32.vlgmr.msrb.gmra.mxu2 %vm487_vm1, %v1702_v52  ;;  %1033 = vmatpush.msra.mxu0 %v257_v24  ;;  %v1127_v52 = vld [vmem:[#allocation8 + $0x1d8] sm:$0xff] }
  0xe9   :  { %1236 = vmatpush.msra.mxu2 %v1099_v25  ;;  %1258 = vmatpush.msrb.mxu3 %v1113_v26  ;;  %v1134_v25 = vld [vmem:[#allocation8 + $0x210] sm:$0xff]  ;;  %v1101_v26 = vld [vmem:[#allocation8 + $0x108] sm:$0xff] }
  0xea   :  { %1034 = vmatpush.msra.mxu0 %v248_v27  ;;  %1299 = vmatpush.msra.mxu1 %v1144_v35  ;;  %v1119_v35 = vld [vmem:[#allocation8 + $0x198] sm:$0xff] }
  0xeb   :  { %1237 = vmatpush.msra.mxu2 %v1098_v29  ;;  %1035 = vmatmul.f32.vlgmr.msra.gmra.mxu0 %v1707_v1  ;;  %v1091_v1 = vld [vmem:[#allocation8 + $0xb8] sm:$0xff]  ;;  %v1086_v29 = vld [vmem:[#allocation8 + $0x90] sm:$0xff] }
  0xec   :  { %1259 = vmatpush.msrb.mxu3 %v1112_v30  ;;  %1276 = vmatpush.msrb.mxu0 %v1131_v33  ;;  %v1133_v30 = vld [vmem:[#allocation8 + $0x208] sm:$0xff] }
  0xed   :  { %1238 = vmatpush.msra.mxu2 %v1097_v34  ;;  %1300 = vmatpush.msra.mxu1 %v1143_v40  ;;  %v1100_v34 = vld [vmem:[#allocation8 + $0x100] sm:$0xff] }
  0xee   :  { %1260 = vmatpush.msrb.mxu3 %v1111_v36  ;;  %1277 = vmatpush.msrb.mxu0 %v1130_v38  ;;  %v637_v36 = vadd.f32 %v1713_v53, %v617_v22  ;;  %v1085_v38 = vld [vmem:[#allocation8 + $0x88] sm:$0xff]  ;;  %v1179_v53 = vld [vmem:[#allocation8 + $0x378] sm:$0xff] }
  0xef   :  { %1239 = vmatpush.msra.mxu2 %v1096_v39  ;;  %1301 = vmatpush.msra.mxu1 %v1142_v45  ;;  %v1084_v45 = vld [vmem:[#allocation8 + $0x80] sm:$0xff]  ;;  %v1151_v22 = vld [vmem:[#allocation8 + $0x298] sm:$0xff] }
  0xf0   :  { %1261 = vmatpush.msrb.mxu3 %v1110_v42  ;;  %1278 = vmatpush.msrb.mxu0 %v1129_v43  ;;  %v1118_v43 = vld [vmem:[#allocation8 + $0x190] sm:$0xff] }
  0xf1   :  { %1240 = vmatpush.msra.mxu2 %v1095_v44  ;;  %1302 = vmatpush.msra.mxu1 %v1141_v50  ;;  %v1132_v44 = vld [vmem:[#allocation8 + $0x200] sm:$0xff] }
  0xf2   :  { %1262 = vmatpush.msrb.mxu3 %v1109_v47  ;;  %1279 = vmatpush.msrb.mxu0 %v1128_v48  ;;  %v1117_v47 = vld [vmem:[#allocation8 + $0x188] sm:$0xff]  ;;  %v1060_v48 = vmax.f32 %v637_v36, 0.0  ;;  %v1166_v36 = vld [vmem:[#allocation8 + $0x310] sm:$0xff] }
  0xf3   :  { %1241 = vmatpush.msra.mxu2 %v1094_v49  ;;  %1303 = vmatpush.msra.mxu1 %v1140_v55  ;;  %v1163_v49 = vld [vmem:[#allocation8 + $0x2f8] sm:$0xff]  ;;  %v1161_v55 = vld [vmem:[#allocation8 + $0x2e8] sm:$0xff] }
  0xf4   :  { %1263 = vmatpush.msrb.mxu3 %v1108_v51  ;;  %1280 = vmatpush.msrb.mxu0 %v1127_v52  ;;  %v1116_v51 = vld [vmem:[#allocation8 + $0x180] sm:$0xff]  ;;  %v1162_v52 = vld [vmem:[#allocation8 + $0x2f0] sm:$0xff] }
  0xf5   :  { %1242 = vmatpush.msra.mxu2 %v1093_v54  ;;  %v656_v2 = vpop.f32.mrf.mxu1  ;;  %1304 = vmatpush.msra.mxu1 %v1139_v60  ;;  %v1178_v54 = vld [vmem:[#allocation8 + $0x370] sm:$0xff]  ;;  %v1159_v60 = vld [vmem:[#allocation8 + $0x2d8] sm:$0xff] }
  0xf6   :  { %1264 = vmatpush.msrb.mxu3 %v1107_v56  ;;  %1281 = vmatpush.msrb.mxu0 %v1126_v57  ;;  %v657_v4 = vadd.f32 %v656_v2, %v471_v58  ;;  %v1177_v56 = vld [vmem:[#allocation8 + $0x368] sm:$0xff]  ;;  %v1195_v57 = vld [vmem:[#allocation8 + $0x3f8] sm:$0xff]  ;;  %v1160_v58 = vld [vmem:[#allocation8 + $0x2e0] sm:$0xff] }
  0xf7   :  { %1243 = vmatpush.msra.mxu2 %v1092_v59  ;;  %v676_v6 = vpop.f32.mrf.mxu3  ;;  %1305 = vmatpush.msra.mxu1 %v1138_v31  ;;  %v1176_v59 = vld [vmem:[#allocation8 + $0x360] sm:$0xff]  ;;  %v1157_v31 = vld [vmem:[#allocation8 + $0x2c8] sm:$0xff] }
  0xf8   :  { %1265 = vmatpush.msrb.mxu3 %v1106_v61  ;;  %1282 = vmatpush.msrb.mxu0 %v1125_v62  ;;  %v677_v10 = vadd.f32 %v676_v6, %v657_v4  ;;  %v473_v61 = vperm.slane %v1699_v37, 4  ;;  %v1175_v62 = vld [vmem:[#allocation8 + $0x358] sm:$0xff]  ;;  %v1173_v4 = vld [vmem:[#allocation8 + $0x348] sm:$0xff]  ;;  %v1156_v6 = vld [vmem:[#allocation8 + $0x2c0] sm:$0xff] }
  0xf9   :  { %1244 = vmatpush.msra.mxu2 %v1091_v1  ;;  %1306 = vmatpush.msra.mxu1 %v1137_v8  ;;  %v1174_v1 = vld [vmem:[#allocation8 + $0x350] sm:$0xff]  ;;  %v1172_v8 = vld [vmem:[#allocation8 + $0x340] sm:$0xff] }
  0xfa   :  { %1266 = vmatpush.msrb.mxu3 %v1105_v3  ;;  %1283 = vmatpush.msrb.mxu0 %v1124_v5  ;;  %v696_v14 = vpop.f32.mrf.mxu0 }
  0xfb   :  { %1245 = vmatpush.msra.mxu2 %v1090_v7  ;;  %v697_v20 = vadd.f32 %v696_v14, %v677_v10  ;;  %1307 = vmatpush.msra.mxu1 %v1136_v15  ;;  %v1155_v10 = vld [vmem:[#allocation8 + $0x2b8] sm:$0xff]  ;;  %v1153_v14 = vld [vmem:[#allocation8 + $0x2a8] sm:$0xff]  ;;  %v1170_v15 = vld [vmem:[#allocation8 + $0x330] sm:$0xff] }
  0xfc   :  { %1267 = vmatpush.msrb.mxu3 %v1104_v9  ;;  %1284 = vmatpush.msrb.mxu0 %v1123_v11  ;;  %v1171_v11 = vld [vmem:[#allocation8 + $0x338] sm:$0xff] }
  0xfd   :  { %1246 = vmatpush.msra.mxu2 %v1089_v13  ;;  %v716_v24 = vpop.f32.mrf.mxu2  ;;  %1308 = vmatpush.msra.mxu1 %v1135_v19  ;;  %v1061_v33 = vmax.f32 %v697_v20, 0.0  ;;  %v1154_v13 = vld [vmem:[#allocation8 + $0x2b0] sm:$0xff]  ;;  %v1152_v19 = vld [vmem:[#allocation8 + $0x2a0] sm:$0xff] }
  0xfe   :  { %1268 = vmatpush.msrb.mxu3 %v1103_v16  ;;  %1285 = vmatpush.msrb.mxu0 %v1122_v41  ;;  %v717_v27 = vadd.f32 %v716_v24, %v472_v17  ;;  %v1194_v16 = vld [vmem:[#allocation8 + $0x3f0] sm:$0xff]  ;;  %v474_v41 = vperm.slane %v1699_v37, 5  ;;  %v1169_v17 = vld [vmem:[#allocation8 + $0x328] sm:$0xff]  ;;  %v1192_v20 = vld [vmem:[#allocation8 + $0x3e0] sm:$0xff] }
  0xff   :  { %1247 = vmatpush.msra.mxu2 %v1088_v18  ;;  %1309 = vmatpush.msra.mxu1 %v1134_v25  ;;  %v1193_v18 = vld [vmem:[#allocation8 + $0x3e8] sm:$0xff]  ;;  %v1150_v25 = vld [vmem:[#allocation8 + $0x290] sm:$0xff] }
 0x100   :  { %1269 = vmatpush.msrb.mxu3 %v1102_v21  ;;  %1286 = vmatpush.msrb.mxu0 %v1121_v32  ;;  %v1168_v21 = vld [vmem:[#allocation8 + $0x320] sm:$0xff] }
 0x101   :  { %1248 = vmatpush.msra.mxu2 %v1087_v23  ;;  %v736_v39 = vpop.f32.mrf.mxu1  ;;  %1310 = vmatpush.msra.mxu1 %v1133_v30  ;;  %v1148_v30 = vld [vmem:[#allocation8 + $0x280] sm:$0xff] }
 0x102   :  { %1270 = vmatpush.msrb.mxu3 %v1101_v26  ;;  %1287 = vmatpush.msrb.mxu0 %v1120_v28  ;;  %v737_v40 = vadd.f32 %v736_v39, %v717_v27  ;;  %v756_v42 = vpop.f32.mrf.mxu3  ;;  %v1149_v28 = vld [vmem:[#allocation8 + $0x288] sm:$0xff] }
 0x103   :  { %1249 = vmatpush.msra.mxu2 %v1086_v29  ;;  %1311 = vmatpush.msra.mxu1 %v1132_v44  ;;  %v1165_v39 = vld [vmem:[#allocation8 + $0x308] sm:$0xff]  ;;  %v1211_v44 = vld [vmem:[#allocation8 + $0x478] sm:$0xff] }
 0x104   :  { %1271 = vmatpush.msrb.mxu3 %v1100_v34  ;;  %1288 = vmatpush.msrb.mxu0 %v1119_v35  ;;  %v757_v46 = vadd.f32 %v756_v42, %v737_v40  ;;  %v1191_v34 = vld [vmem:[#allocation8 + $0x3d8] sm:$0xff]  ;;  %v1189_v40 = vld [vmem:[#allocation8 + $0x3c8] sm:$0xff]  ;;  %v1164_v42 = vld [vmem:[#allocation8 + $0x300] sm:$0xff] }
 0x105   :  { %1250 = vmatpush.msra.mxu2 %v1085_v38  ;;  %1272 = vmatmul.f32.vlgmr.msrb.gmra.mxu3 %v1061_v33  ;;  %v1167_v33 = vld [vmem:[#allocation8 + $0x318] sm:$0xff]  ;;  %v1190_v38 = vld [vmem:[#allocation8 + $0x3d0] sm:$0xff] }
 0x106   :  { %1289 = vmatpush.msrb.mxu0 %v1118_v43  ;;  %v1062_v50 = vmax.f32 %v757_v46, 0.0  ;;  %1336 = vmatpush.msra.mxu3 %v1179_v53  ;;  %v1188_v43 = vld [vmem:[#allocation8 + $0x3c0] sm:$0xff]  ;;  %v1187_v46 = vld [vmem:[#allocation8 + $0x3b8] sm:$0xff] }
 0x107   :  { %1251 = vmatpush.msra.mxu2 %v1084_v45  ;;  %v1210_v45 = vld [vmem:[#allocation8 + $0x470] sm:$0xff]  ;;  %1376 = vmatpush.msrb.mxu1 %v1211_v44  ;;  %v1207_v53 = vld [vmem:[#allocation8 + $0x458] sm:$0xff] }
 0x108   :  { %1252 = vmatmul.f32.vlgmr.msra.gmra.mxu2 %v1060_v48  ;;  %1290 = vmatpush.msrb.mxu0 %v1117_v47  ;;  %v1209_v47 = vld [vmem:[#allocation8 + $0x468] sm:$0xff]  ;;  %v1186_v48 = vld [vmem:[#allocation8 + $0x3b0] sm:$0xff] }
 0x109   :  { %1316 = vmatpush.msrb.mxu2 %v1163_v49  ;;  %1337 = vmatpush.msra.mxu3 %v1178_v54  ;;  %v1185_v49 = vld [vmem:[#allocation8 + $0x3a8] sm:$0xff]  ;;  %v1182_v54 = vld [vmem:[#allocation8 + $0x390] sm:$0xff] }
 0x10a   :  { %1291 = vmatpush.msrb.mxu0 %v1116_v51  ;;  %1377 = vmatpush.msrb.mxu1 %v1210_v45  ;;  %v1208_v51 = vld [vmem:[#allocation8 + $0x460] sm:$0xff] }
 0x10b   :  { %1317 = vmatpush.msrb.mxu2 %v1162_v52  ;;  %1292 = vmatmul.f32.vlgmr.msrb.gmra.mxu0 %v1062_v50  ;;  %v1184_v50 = vld [vmem:[#allocation8 + $0x3a0] sm:$0xff]  ;;  %v1183_v52 = vld [vmem:[#allocation8 + $0x398] sm:$0xff] }
 0x10c   :  { %1356 = vmatpush.msra.mxu0 %v1195_v57  ;;  %1338 = vmatpush.msra.mxu3 %v1177_v56  ;;  %v1206_v56 = vld [vmem:[#allocation8 + $0x450] sm:$0xff]  ;;  %v1181_v57 = vld [vmem:[#allocation8 + $0x388] sm:$0xff] }
 0x10d   :  { %1318 = vmatpush.msrb.mxu2 %v1161_v55  ;;  %1378 = vmatpush.msrb.mxu1 %v1209_v47 }
 0x10e   :  { %1339 = vmatpush.msra.mxu3 %v1176_v59  ;;  %1357 = vmatpush.msra.mxu0 %v1194_v16  ;;  %v475_v59 = vperm.slane %v1699_v37, 6 }
 0x10f   :  { %1319 = vmatpush.msrb.mxu2 %v1160_v58  ;;  %1379 = vmatpush.msrb.mxu1 %v1208_v51  ;;  %v1205_v58 = vld [vmem:[#allocation8 + $0x448] sm:$0xff] }
 0x110   :  { %v776_v0 = vpop.f32.mrf.mxu0  ;;  %1340 = vmatpush.msra.mxu3 %v1175_v62  ;;  %1358 = vmatpush.msra.mxu0 %v1193_v18  ;;  %v1446_v18 = vld [vmem:[#allocation7 + $0x8] ss:$0 sm:$0xff] }
 0x111   :  { %1320 = vmatpush.msrb.mxu2 %v1159_v60  ;;  %v777_v2 = vadd.f32 %v776_v0, %v473_v61  ;;  %v796_v3 = vpop.f32.mrf.mxu2  ;;  %1380 = vmatpush.msrb.mxu1 %v1207_v53  ;;  %v1180_v60 = vld [vmem:[#allocation8 + $0x380] sm:$0xff]  ;;  %v1202_v0 = vld [vmem:[#allocation8 + $0x430] sm:$0xff] }
 0x112   :  { %1341 = vmatpush.msra.mxu3 %v1174_v1  ;;  %1359 = vmatpush.msra.mxu0 %v1192_v20  ;;  %v1204_v61 = vld [vmem:[#allocation8 + $0x440] sm:$0xff] }
 0x113   :  { %1321 = vmatpush.msrb.mxu2 %v1158_v63  ;;  %v797_v5 = vadd.f32 %v796_v3, %v777_v2  ;;  %1381 = vmatpush.msrb.mxu1 %v1206_v56  ;;  %v1203_v63 = vld [vmem:[#allocation8 + $0x438] sm:$0xff]  ;;  %v1201_v2 = vld [vmem:[#allocation8 + $0x428] sm:$0xff] }
 0x114   :  { %v816_v7 = vpop.f32.mrf.mxu3  ;;  %1342 = vmatpush.msra.mxu3 %v1173_v4  ;;  %1360 = vmatpush.msra.mxu0 %v1191_v34 }
 0x115   :  { %1322 = vmatpush.msrb.mxu2 %v1157_v31  ;;  %v817_v9 = vadd.f32 %v816_v7, %v797_v5  ;;  %1382 = vmatpush.msrb.mxu1 %v1205_v58  ;;  %v1200_v5 = vld [vmem:[#allocation8 + $0x420] sm:$0xff]  ;;  %v1199_v7 = vld [vmem:[#allocation8 + $0x418] sm:$0xff] }
 0x116   :  { %1343 = vmatpush.msra.mxu3 %v1172_v8  ;;  %1361 = vmatpush.msra.mxu0 %v1190_v38  ;;  %v1198_v8 = vld [vmem:[#allocation8 + $0x410] sm:$0xff] }
 0x117   :  { %1323 = vmatpush.msrb.mxu2 %v1156_v6  ;;  %v1063_v12 = vmax.f32 %v817_v9, 0.0  ;;  %1383 = vmatpush.msrb.mxu1 %v1204_v61  ;;  %v1197_v9 = vld [vmem:[#allocation8 + $0x408] sm:$0xff] }
 0x118   :  { %1344 = vmatpush.msra.mxu3 %v1171_v11  ;;  %1362 = vmatpush.msra.mxu0 %v1189_v40  ;;  %v476_v11 = vperm.slane %v1699_v37, 7 }
 0x119   :  { %1324 = vmatpush.msrb.mxu2 %v1155_v10  ;;  %1312 = vmatmul.f32.vlgmr.msra.gmra.mxu1 %v1063_v12  ;;  %v1196_v10 = vld [vmem:[#allocation8 + $0x400] sm:$0xff] }
 0x11a   :  { %1345 = vmatpush.msra.mxu3 %v1170_v15  ;;  %1363 = vmatpush.msra.mxu0 %v1188_v43 }
 0x11b   :  { %1325 = vmatpush.msrb.mxu2 %v1154_v13  ;;  %1384 = vmatpush.msrb.mxu1 %v1203_v63 }
 0x11c   :  { %1346 = vmatpush.msra.mxu3 %v1169_v17  ;;  %1364 = vmatpush.msra.mxu0 %v1187_v46 }
 0x11d   :  { %1326 = vmatpush.msrb.mxu2 %v1153_v14  ;;  %v836_v32 = vpop.f32.mrf.mxu1  ;;  %1385 = vmatpush.msrb.mxu1 %v1202_v0 }
 0x11e   :  { %v837_v23 = vadd.f32 %v836_v32, %v474_v41  ;;  %1347 = vmatpush.msra.mxu3 %v1168_v21  ;;  %1365 = vmatpush.msra.mxu0 %v1186_v48 }
 0x11f   :  { %1327 = vmatpush.msrb.mxu2 %v1152_v19  ;;  %v856_v24 = vpop.f32.mrf.mxu0  ;;  %1386 = vmatpush.msrb.mxu1 %v1201_v2 }
 0x120   :  { %v857_v26 = vadd.f32 %v856_v24, %v837_v23  ;;  %1348 = vmatpush.msra.mxu3 %v1167_v33  ;;  %1366 = vmatpush.msra.mxu0 %v1185_v49 }
 0x121   :  { %1328 = vmatpush.msrb.mxu2 %v1151_v22  ;;  %v876_v27 = vpop.f32.mrf.mxu3  ;;  %1387 = vmatpush.msrb.mxu1 %v1200_v5 }
 0x122   :  { %v877_v29 = vadd.f32 %v876_v27, %v857_v26  ;;  %1349 = vmatpush.msra.mxu3 %v1166_v36  ;;  %1367 = vmatpush.msra.mxu0 %v1184_v50 }
 0x123   :  { %1329 = vmatpush.msrb.mxu2 %v1150_v25  ;;  %1388 = vmatpush.msrb.mxu1 %v1199_v7  ;;  %v1445_v25 = vld [vmem:[#allocation10] ss:$0 sm:$0xff] }
 0x124   :  { %v1064_v35 = vmax.f32 %v877_v29, 0.0  ;;  %1350 = vmatpush.msra.mxu3 %v1165_v39  ;;  %1368 = vmatpush.msra.mxu0 %v1183_v52 }
 0x125   :  { %1330 = vmatpush.msrb.mxu2 %v1149_v28  ;;  %1389 = vmatpush.msrb.mxu1 %v1198_v8 }
 0x126   :  { %1351 = vmatpush.msra.mxu3 %v1164_v42  ;;  %1369 = vmatpush.msra.mxu0 %v1182_v54 }
 0x127   :  { %1331 = vmatpush.msrb.mxu2 %v1148_v30  ;;  %1390 = vmatpush.msrb.mxu1 %v1197_v9 }
 0x128   :  { %1332 = vmatmul.f32.vlgmr.msrb.gmra.mxu2 %v1064_v35  ;;  %1370 = vmatpush.msra.mxu0 %v1181_v57 }
 0x129   :  { %1391 = vmatpush.msrb.mxu1 %v1196_v10 }
 0x12a   :  { %1371 = vmatpush.msra.mxu0 %v1180_v60 }
 0x137   :  { %v896_v55 = vpop.f32.mrf.mxu2 }
 0x138   :  { %v897_v62 = vadd.f32 %v896_v55, %v475_v59 }
 0x143   :  { %v916_v1 = vpop.f32.mrf.mxu3 }
 0x144   :  { %v917_v31 = vadd.f32 %v916_v1, %v897_v62 }
 0x145   :  { %v936_v3 = vpop.f32.mrf.mxu2 }
 0x146   :  { %v937_v4 = vadd.f32 %v936_v3, %v917_v31 }
 0x148   :  { %v1065_v6 = vmax.f32 %v937_v4, 0.0 }
 0x14a   :  { %1352 = vmatmul.f32.vlgmr.msra.gmra.mxu3 %v1065_v6 }
 0x153   :  { %v956_v12 = vpop.f32.mrf.mxu0 }
 0x154   :  { %v957_v13 = vadd.f32 %v956_v12, %v476_v11 }
 0x156   :  { %v976_v14 = vpop.f32.mrf.mxu1 }
 0x157   :  { %v977_v15 = vadd.f32 %v976_v14, %v957_v13  ;;  %v996_v16 = vpop.f32.mrf.mxu2 }
 0x159   :  { %v997_v41 = vadd.f32 %v996_v16, %v977_v15 }
 0x15b   :  { %v1066_v17 = vmax.f32 %v997_v41, 0.0 }
 0x15d   :  { %1372 = vmatmul.f32.vlgmr.msra.gmra.mxu0 %v1066_v17 }
 0x15e   :  { %v1233_v37 = vpop.f32.mrf.mxu1 }
 0x15f   :  { %v1234_v27 = vadd.f32 %v1445_v25, %v1233_v37 }
 0x166   :  { %v1016_v19 = vpop.f32.mrf.mxu3 }
 0x167   :  { %v1017_v20 = vadd.f32 %v1446_v18, %v1016_v19 }
 0x168   :  { %v1036_v21 = vpop.f32.mrf.mxu0 }
 0x169   :  { %v1037_v32 = vadd.f32 %v1036_v21, %v1017_v20 }
 0x16b   :  { %v1056_v22 = vpop.f32.mrf.mxu2 }
 0x16c   :  { %v1057_v23 = vadd.f32 %v1056_v22, %v1037_v32 }
 0x16e   :  { %v1067_v24 = vmax.f32 %v1057_v23, 0.0 }
 0x170   :  { %1392 = vmatmul.f32.vlgmr.msrb.gmra.mxu1 %v1067_v24 }
 0x188   :  { %v1273_v29 = vpop.f32.mrf.mxu3  ;;  %v1293_v33 = vpop.f32.mrf.mxu0 }
 0x18b   :  { %v1253_v26 = vpop.f32.mrf.mxu2 }
 0x18c   :  { %v1254_v28 = vadd.f32 %v1253_v26, %v1234_v27 }
 0x18e   :  { %v1274_v30 = vadd.f32 %v1273_v29, %v1254_v28 }
 0x190   :  { %v1294_v35 = vadd.f32 %v1293_v33, %v1274_v30 }
 0x196   :  { %v1313_v34 = vpop.f32.mrf.mxu1 }
 0x197   :  { %v1314_v38 = vadd.f32 %v1313_v34, %v1294_v35 }
 0x1ab   :  { %v1333_v36 = vpop.f32.mrf.mxu2 }
 0x1ac   :  { %v1334_v40 = vadd.f32 %v1333_v36, %v1314_v38 }
 0x1cd   :  { %v1353_v39 = vpop.f32.mrf.mxu3 }
 0x1ce   :  { %v1354_v43 = vadd.f32 %v1353_v39, %v1334_v40 }
 0x1da   :  { %v1373_v42 = vpop.f32.mrf.mxu0 }
 0x1db   :  { %v1374_v44 = vadd.f32 %v1373_v42, %v1354_v43 }
 0x1ed   :  { %v1393_v45 = vpop.f32.mrf.mxu1 }
 0x1ee   :  { %v1394_v46 = vadd.f32 %v1393_v45, %v1374_v44 }
 0x1f0   :  { %v1396_v47 = vmax.f32 %v1394_v46, 0.0 }
 0x1f2   :  { %1397 = vst [vmem:[#allocation11] sm:$0xff] %v1396_v47 }
 0x1f3   :  { %1408 = dma.vmem_to_hbm [thread:$0]  %s1404_s4, 128, %s1406_s21, [#allocation4]  }
 0x1f4   :  { %1600 = dma.done.wait [#allocation4], 128  }
 0x1f5   :  { %1601 = vsyncadd [#allocation4], 4294967168 }
 0x1f6   :  { %1413 = vsyncpa [#allocation3], 1 }
 0x1f7   :  { %1414 = vsyncpa [#allocation6], 1 }
 0x1f8   :  { %1415 = vsyncpa [#allocation9], 1 }
 0x1f9   :  { %1416 = vsyncpa [#allocation4], 1 }

</bundles_post_ra>
